<compile_context>
chip_gen: v7x
topology: tpu7x:2x2x1
jax: 0.10.0
libtpu: 0.0.40
codegen_flags: <defaults>
</compile_context>

<pallas_src>
import jax
import jax.numpy as jnp
from jax.experimental import pallas as pl
from jax.experimental.pallas import tpu as pltpu

LN_EPS = 1e-5


def st_conv_block_kernel(x_ref,       # (1, T, c0, n)  input block (one batch)
                         a1_ref,      # (c1, c0)       align1 matrix (pad / 1x1 conv)
                         ab1_ref,     # (c1, 1)        align1 bias
                         w1p_ref,     # (2c1, kt*c0)   tconv1 weight, taps packed on K
                         b1_ref,      # (2c1, 1)       tconv1 bias
                         thetas_ref,  # (ks*c1, c1)    sconv theta, k-stacked
                         lkT_ref,     # (ks, n, n)     Lk[k]^T
                         bs_ref,      # (c1, 1)        sconv bias
                         a2_ref,      # (c2, c1)       align2 matrix
                         ab2_ref,     # (c2, 1)        align2 bias
                         w2p_ref,     # (c2, kt*c1)    tconv2 weight, taps packed on K
                         b2_ref,      # (c2, 1)        tconv2 bias
                         g_ref,       # (c2, n)        LayerNorm gamma (transposed)
                         bt_ref,      # (c2, n)        LayerNorm beta  (transposed)
                         o_ref):      # (1, T2, c2, n) output block (one batch)
    T = x_ref.shape[1]
    c0 = x_ref.shape[2]
    n = x_ref.shape[3]
    c1 = a1_ref.shape[0]
    c2 = a2_ref.shape[0]
    kt = w1p_ref.shape[1] // c0
    ks = lkT_ref.shape[0]
    T1 = T - kt + 1
    T2 = T1 - kt + 1

    # Hoist all parameter loads out of the time loops.
    a1, ab1 = a1_ref[...], ab1_ref[...]
    w1p, b1 = w1p_ref[...], b1_ref[...]
    thetas, bs = thetas_ref[...], bs_ref[...]
    a2, ab2 = a2_ref[...], ab2_ref[...]
    w2p, b2 = w2p_ref[...], b2_ref[...]
    gamma, beta = g_ref[...], bt_ref[...]

    # ---- Stage 1+2: tconv1 (GLU) then sconv (graph conv + residual relu), per time ----
    xs_list = []
    for t in range(T1):                                   # static, small (T1 = T-kt+1)
        # im2col: stack the kt taps along channels -> one K = kt*c0 matmul
        win = jnp.concatenate([x_ref[0, t + dt] for dt in range(kt)], axis=0)  # (kt*c0, n)
        conv1 = jnp.dot(w1p, win, preferred_element_type=jnp.float32) + b1     # (2c1, n)
        x_in = jnp.dot(a1, x_ref[0, t + kt - 1],
                       preferred_element_type=jnp.float32) + ab1               # (c1, n)
        x_t1 = (conv1[:c1] + x_in) * jax.nn.sigmoid(conv1[c1:])                # (c1, n)

        # sconv: sum_k Theta_k @ x_t1 @ Lk[k]^T  (+ bias, residual, relu)
        s = jnp.dot(thetas, x_t1, preferred_element_type=jnp.float32)          # (ks*c1, n)
        gc = jnp.zeros((c1, n), jnp.float32)
        for k in range(ks):
            gc = gc + jnp.dot(s[k * c1:(k + 1) * c1], lkT_ref[k],
                              preferred_element_type=jnp.float32)
        xs_list.append(jnp.maximum(gc + bs + x_t1, 0.0))                       # (c1, n)

    # ---- Stage 3+4: tconv2 (relu) then LayerNorm over the (c2, n) slab, per time ----
    y_list = []
    for t in range(T2):
        win2 = jnp.concatenate([xs_list[t + dt] for dt in range(kt)], axis=0)  # (kt*c1, n)
        conv2 = jnp.dot(w2p, win2, preferred_element_type=jnp.float32) + b2    # (c2, n)
        x_in2 = jnp.dot(a2, xs_list[t + kt - 1],
                        preferred_element_type=jnp.float32) + ab2              # (c2, n)
        x_t2 = jnp.maximum(conv2 + x_in2, 0.0)                                 # (c2, n)

        # LayerNorm([n, c2]) == normalize over the full (c2, n) slab for this (b, t)
        mu = jnp.mean(x_t2, keepdims=True)
        var = jnp.mean((x_t2 - mu) ** 2, keepdims=True)
        y_list.append((x_t2 - mu) * jax.lax.rsqrt(var + LN_EPS) * gamma + beta)

    # Single full-block store (no per-row partial stores).
    # TODO(synk): nn.Dropout is treated as identity (eval mode); no RNG mask applied.
    o_ref[...] = jnp.stack(y_list, axis=0)[None].astype(o_ref.dtype)


def _align_params(c_in, c_out, w=None, b=None):
    """Fold `align` (identity / zero-pad / 1x1 conv) into a (c_out, c_in) matrix + bias."""
    if c_in > c_out:
        return (w.reshape(c_out, c_in).astype(jnp.float32),
                b.reshape(c_out, 1).astype(jnp.float32))
    return jnp.eye(c_out, c_in, dtype=jnp.float32), jnp.zeros((c_out, 1), jnp.float32)


def st_conv_block_forward(x, params, kt, ks):
    """x: (B, c0, T, n) float32 (NCHW).  Returns (B, c2, T2, n)."""
    B, c0, T, n = x.shape
    w1, b1 = params["w1"], params["b1"]            # (kt, 2c1, c0), (2c1, 1)
    w2, b2 = params["w2"], params["b2"]            # (kt, c2, c1), (c2, 1)
    c1 = b1.shape[0] // 2
    c2 = b2.shape[0]
    T1 = T - kt + 1
    T2 = T1 - kt + 1

    # Pack parameters for the kernel layout (all tiny; done once outside the kernel).
    a1, ab1 = _align_params(c0, c1, params.get("align1_w"), params.get("align1_b"))
    a2, ab2 = _align_params(c1, c2, params.get("align2_w"), params.get("align2_b"))
    w1p = jnp.transpose(w1, (1, 0, 2)).reshape(2 * c1, kt * c0)
    w2p = jnp.transpose(w2, (1, 0, 2)).reshape(c2, kt * c1)
    thetas = jnp.transpose(params["theta"], (2, 1, 0)).reshape(ks * c1, c1)  # [k*c1+o, i]
    lkT = jnp.transpose(params["Lk"], (0, 2, 1))                             # (ks, n, n)
    gamma_cn = params["gamma"].T                                             # (c2, n)
    beta_cn = params["beta"].T

    x_k = jnp.transpose(x, (0, 2, 1, 3))           # (B, T, c0, n): per-time (c,n) slabs

    out = pl.pallas_call(
        st_conv_block_kernel,
        out_shape=jax.ShapeDtypeStruct((B, T2, c2, n), x.dtype),
        grid_spec=pltpu.PrefetchScalarGridSpec(
            num_scalar_prefetch=0,
            grid=(B,),
            in_specs=[
                pl.BlockSpec((1, T, c0, n), lambda b: (b, 0, 0, 0)),    # x
                pl.BlockSpec((c1, c0), lambda b: (0, 0)),               # a1
                pl.BlockSpec((c1, 1), lambda b: (0, 0)),                # ab1
                pl.BlockSpec((2 * c1, kt * c0), lambda b: (0, 0)),      # w1p
                pl.BlockSpec((2 * c1, 1), lambda b: (0, 0)),            # b1
                pl.BlockSpec((ks * c1, c1), lambda b: (0, 0)),          # thetas
                pl.BlockSpec((ks, n, n), lambda b: (0, 0, 0)),          # LkT
                pl.BlockSpec((c1, 1), lambda b: (0, 0)),                # bs
                pl.BlockSpec((c2, c1), lambda b: (0, 0)),               # a2
                pl.BlockSpec((c2, 1), lambda b: (0, 0)),                # ab2
                pl.BlockSpec((c2, kt * c1), lambda b: (0, 0)),          # w2p
                pl.BlockSpec((c2, 1), lambda b: (0, 0)),                # b2
                pl.BlockSpec((c2, n), lambda b: (0, 0)),                # gamma
                pl.BlockSpec((c2, n), lambda b: (0, 0)),                # beta
            ],
            out_specs=pl.BlockSpec((1, T2, c2, n), lambda b: (b, 0, 0, 0)),
        ),
        compiler_params=pltpu.CompilerParams(
            dimension_semantics=("parallel",)),
    )(x_k, a1, ab1, w1p, b1, thetas, lkT, params["bs"], a2, ab2, w2p, b2,
      gamma_cn, beta_cn)

    return jnp.transpose(out, (0, 2, 1, 3))        # (B, c2, T2, n) NCHW


def reference_forward(x, params, kt, ks):
    """Pure-JAX reference with the PyTorch st_conv_block semantics (eval mode)."""
    B, c0, T, n = x.shape
    w1, b1 = params["w1"], params["b1"]
    w2, b2 = params["w2"], params["b2"]
    c1 = b1.shape[0] // 2
    c2 = b2.shape[0]
    T1 = T - kt + 1
    T2 = T1 - kt + 1

    # tconv1 (GLU)
    a1, ab1 = _align_params(c0, c1, params.get("align1_w"), params.get("align1_b"))
    conv1 = sum(jnp.einsum("oi,bitn->botn", w1[dt], x[:, :, dt:dt + T1, :])
                for dt in range(kt)) + b1[None, :, :, None]
    x_in1 = jnp.einsum("oi,bitn->botn", a1, x[:, :, kt - 1:, :]) + ab1[None, :, :, None]
    x_t1 = (conv1[:, :c1] + x_in1) * jax.nn.sigmoid(conv1[:, c1:])      # (B,c1,T1,n)

    # sconv
    x_c = jnp.einsum("knm,bitm->bitkn", params["Lk"], x_t1)
    x_gc = jnp.einsum("iok,bitkn->botn", params["theta"], x_c) + params["bs"][None, :, :, None]
    x_s = jax.nn.relu(x_gc + x_t1)                                      # (B,c1,T1,n)

    # tconv2 (relu)
    a2, ab2 = _align_params(c1, c2, params.get("align2_w"), params.get("align2_b"))
    conv2 = sum(jnp.einsum("oi,bitn->botn", w2[dt], x_s[:, :, dt:dt + T2, :])
                for dt in range(kt)) + b2[None, :, :, None]
    x_in2 = jnp.einsum("oi,bitn->botn", a2, x_s[:, :, kt - 1:, :]) + ab2[None, :, :, None]
    x_t2 = jax.nn.relu(conv2 + x_in2)                                   # (B,c2,T2,n)

    # LayerNorm([n, c2]) on (B, T2, n, c2), then permute back; dropout = identity.
    y = jnp.transpose(x_t2, (0, 2, 3, 1))
    mu = jnp.mean(y, axis=(2, 3), keepdims=True)
    var = jnp.mean((y - mu) ** 2, axis=(2, 3), keepdims=True)
    y = (y - mu) * jax.lax.rsqrt(var + LN_EPS) * params["gamma"][None, None] \
        + params["beta"][None, None]
    return jnp.transpose(y, (0, 3, 1, 2))                               # (B,c2,T2,n)


def make_params(key, c, T, n, kt, ks):
    c0, c1, c2 = c
    keys = jax.random.split(key, 12)
    s = 0.3
    params = {
        "w1": s * jax.random.normal(keys[0], (kt, 2 * c1, c0), jnp.float32),
        "b1": s * jax.random.normal(keys[1], (2 * c1, 1), jnp.float32),
        "Lk": s * jax.random.normal(keys[2], (ks, n, n), jnp.float32),
        "theta": s * jax.random.normal(keys[3], (c1, c1, ks), jnp.float32),
        "bs": s * jax.random.normal(keys[4], (c1, 1), jnp.float32),
        "w2": s * jax.random.normal(keys[5], (kt, c2, c1), jnp.float32),
        "b2": s * jax.random.normal(keys[6], (c2, 1), jnp.float32),
        "gamma": 1.0 + 0.1 * jax.random.normal(keys[7], (n, c2), jnp.float32),
        "beta": 0.1 * jax.random.normal(keys[8], (n, c2), jnp.float32),
    }
    if c0 > c1:  # align1 uses a 1x1 conv
        params["align1_w"] = s * jax.random.normal(keys[9], (c1, c0), jnp.float32)
        params["align1_b"] = s * jax.random.normal(keys[10], (c1,), jnp.float32)
    if c1 > c2:  # align2 uses a 1x1 conv
        params["align2_w"] = s * jax.random.normal(keys[9], (c2, c1), jnp.float32)
        params["align2_b"] = s * jax.random.normal(keys[11], (c2,), jnp.float32)
    return params


if __name__ == "__main__":
    B, T, n = 2, 8, 16
    kt, ks = 3, 3
    c = (4, 8, 4)        # exercises both align branches (pad in tconv1, 1x1 in tconv2)

    key = jax.random.PRNGKey(0)
    kx, kp = jax.random.split(key)
    x = jax.random.normal(kx, (B, c[0], T, n), jnp.float32)
    params = make_params(kp, c, T, n, kt, ks)

    out = jax.block_until_ready(st_conv_block_forward(x, params, kt, ks))
    ref = jax.block_until_ready(reference_forward(x, params, kt, ks))

    T2 = T - 2 * (kt - 1)
    assert out.shape == (B, c[2], T2, n), out.shape
    assert jnp.allclose(out, ref, atol=1e-4, rtol=1e-4), \
        f"max abs err = {jnp.max(jnp.abs(out - ref))}"

    print("KERNEL_OK")
</pallas_src>

<mosaic_0001>
module attributes {stable_mosaic.version = 11 : i64} {
  func.func @st_conv_block_kernel(%arg0: i32, %arg1: memref<1x8x4x16xf32, #tpu.memory_space<vmem>>, %arg2: memref<8x4xf32, #tpu.memory_space<vmem>>, %arg3: memref<8x1xf32, #tpu.memory_space<vmem>>, %arg4: memref<16x12xf32, #tpu.memory_space<vmem>>, %arg5: memref<16x1xf32, #tpu.memory_space<vmem>>, %arg6: memref<24x8xf32, #tpu.memory_space<vmem>>, %arg7: memref<3x16x16xf32, #tpu.memory_space<vmem>>, %arg8: memref<8x1xf32, #tpu.memory_space<vmem>>, %arg9: memref<4x8xf32, #tpu.memory_space<vmem>>, %arg10: memref<4x1xf32, #tpu.memory_space<vmem>>, %arg11: memref<4x24xf32, #tpu.memory_space<vmem>>, %arg12: memref<4x1xf32, #tpu.memory_space<vmem>>, %arg13: memref<4x16xf32, #tpu.memory_space<vmem>>, %arg14: memref<4x16xf32, #tpu.memory_space<vmem>>, %arg15: memref<1x4x4x16xf32, #tpu.memory_space<vmem>>) attributes {dimension_semantics = [#tpu.dimension_semantics<parallel>], iteration_bounds = array<i64: 2>, scalar_prefetch = 0 : i64, scratch_operands = 0 : i64, tpu.core_type = #tpu.core_type<tc>, window_params = [{transform_indices = @transform_0, window_bounds = array<i64: 1, 8, 4, 16>}, {pipeline_mode = #tpu.pipeline_mode<synchronous>, transform_indices = @transform_1, window_bounds = array<i64: 8, 4>}, {pipeline_mode = #tpu.pipeline_mode<synchronous>, transform_indices = @transform_2, window_bounds = array<i64: 8, 1>}, {pipeline_mode = #tpu.pipeline_mode<synchronous>, transform_indices = @transform_3, window_bounds = array<i64: 16, 12>}, {pipeline_mode = #tpu.pipeline_mode<synchronous>, transform_indices = @transform_4, window_bounds = array<i64: 16, 1>}, {pipeline_mode = #tpu.pipeline_mode<synchronous>, transform_indices = @transform_5, window_bounds = array<i64: 24, 8>}, {pipeline_mode = #tpu.pipeline_mode<synchronous>, transform_indices = @transform_6, window_bounds = array<i64: 3, 16, 16>}, {pipeline_mode = #tpu.pipeline_mode<synchronous>, transform_indices = @transform_7, window_bounds = array<i64: 8, 1>}, {pipeline_mode = #tpu.pipeline_mode<synchronous>, transform_indices = @transform_8, window_bounds = array<i64: 4, 8>}, {pipeline_mode = #tpu.pipeline_mode<synchronous>, transform_indices = @transform_9, window_bounds = array<i64: 4, 1>}, {pipeline_mode = #tpu.pipeline_mode<synchronous>, transform_indices = @transform_10, window_bounds = array<i64: 4, 24>}, {pipeline_mode = #tpu.pipeline_mode<synchronous>, transform_indices = @transform_11, window_bounds = array<i64: 4, 1>}, {pipeline_mode = #tpu.pipeline_mode<synchronous>, transform_indices = @transform_12, window_bounds = array<i64: 4, 16>}, {pipeline_mode = #tpu.pipeline_mode<synchronous>, transform_indices = @transform_13, window_bounds = array<i64: 4, 16>}, {transform_indices = @transform_14, window_bounds = array<i64: 1, 4, 4, 16>}]} {
    %c0 = arith.constant 0 : index
    %c0_0 = arith.constant 0 : index
    %0 = vector.load %arg2[%c0, %c0_0] : memref<8x4xf32, #tpu.memory_space<vmem>>, vector<8x4xf32>
    %c0_1 = arith.constant 0 : index
    %c0_2 = arith.constant 0 : index
    %1 = vector.load %arg3[%c0_1, %c0_2] : memref<8x1xf32, #tpu.memory_space<vmem>>, vector<8x1xf32>
    %c0_3 = arith.constant 0 : index
    %c0_4 = arith.constant 0 : index
    %2 = vector.load %arg4[%c0_3, %c0_4] : memref<16x12xf32, #tpu.memory_space<vmem>>, vector<16x12xf32>
    %c0_5 = arith.constant 0 : index
    %c0_6 = arith.constant 0 : index
    %3 = vector.load %arg5[%c0_5, %c0_6] : memref<16x1xf32, #tpu.memory_space<vmem>>, vector<16x1xf32>
    %c0_7 = arith.constant 0 : index
    %c0_8 = arith.constant 0 : index
    %4 = vector.load %arg6[%c0_7, %c0_8] : memref<24x8xf32, #tpu.memory_space<vmem>>, vector<24x8xf32>
    %c0_9 = arith.constant 0 : index
    %c0_10 = arith.constant 0 : index
    %5 = vector.load %arg8[%c0_9, %c0_10] : memref<8x1xf32, #tpu.memory_space<vmem>>, vector<8x1xf32>
    %c0_11 = arith.constant 0 : index
    %c0_12 = arith.constant 0 : index
    %6 = vector.load %arg9[%c0_11, %c0_12] : memref<4x8xf32, #tpu.memory_space<vmem>>, vector<4x8xf32>
    %c0_13 = arith.constant 0 : index
    %c0_14 = arith.constant 0 : index
    %7 = vector.load %arg10[%c0_13, %c0_14] : memref<4x1xf32, #tpu.memory_space<vmem>>, vector<4x1xf32>
    %c0_15 = arith.constant 0 : index
    %c0_16 = arith.constant 0 : index
    %8 = vector.load %arg11[%c0_15, %c0_16] : memref<4x24xf32, #tpu.memory_space<vmem>>, vector<4x24xf32>
    %c0_17 = arith.constant 0 : index
    %c0_18 = arith.constant 0 : index
    %9 = vector.load %arg12[%c0_17, %c0_18] : memref<4x1xf32, #tpu.memory_space<vmem>>, vector<4x1xf32>
    %c0_19 = arith.constant 0 : index
    %c0_20 = arith.constant 0 : index
    %10 = vector.load %arg13[%c0_19, %c0_20] : memref<4x16xf32, #tpu.memory_space<vmem>>, vector<4x16xf32>
    %c0_21 = arith.constant 0 : index
    %c0_22 = arith.constant 0 : index
    %11 = vector.load %arg14[%c0_21, %c0_22] : memref<4x16xf32, #tpu.memory_space<vmem>>, vector<4x16xf32>
    %c0_23 = arith.constant 0 : index
    %c0_24 = arith.constant 0 : index
    %c0_25 = arith.constant 0 : index
    %c0_26 = arith.constant 0 : index
    %12 = vector.load %arg1[%c0_23, %c0_24, %c0_25, %c0_26] : memref<1x8x4x16xf32, #tpu.memory_space<vmem>>, vector<1x1x4x16xf32>
    %13 = vector.shape_cast %12 : vector<1x1x4x16xf32> to vector<4x16xf32>
    %c0_27 = arith.constant 0 : index
    %c1 = arith.constant 1 : index
    %c0_28 = arith.constant 0 : index
    %c0_29 = arith.constant 0 : index
    %14 = vector.load %arg1[%c0_27, %c1, %c0_28, %c0_29] : memref<1x8x4x16xf32, #tpu.memory_space<vmem>>, vector<1x1x4x16xf32>
    %15 = vector.shape_cast %14 : vector<1x1x4x16xf32> to vector<4x16xf32>
    %c0_30 = arith.constant 0 : index
    %c2 = arith.constant 2 : index
    %c0_31 = arith.constant 0 : index
    %c0_32 = arith.constant 0 : index
    %16 = vector.load %arg1[%c0_30, %c2, %c0_31, %c0_32] : memref<1x8x4x16xf32, #tpu.memory_space<vmem>>, vector<1x1x4x16xf32>
    %17 = vector.shape_cast %16 : vector<1x1x4x16xf32> to vector<4x16xf32>
    %18 = tpu.concatenate %13, %15, %17 in 0 : vector<4x16xf32>, vector<4x16xf32>, vector<4x16xf32> -> vector<12x16xf32>
    %cst = arith.constant dense<0.000000e+00> : vector<16x16xf32>
    %19 = tpu.matmul %2, %18, %cst {dimension_numbers = #tpu.dot_dimension_numbers<[1], [0], [0], [1], [0, 0, 1, 1], [], []>} : vector<16x12xf32>, vector<12x16xf32>, vector<16x16xf32> -> vector<16x16xf32>
    %20 = vector.broadcast %3 : vector<16x1xf32> to vector<16x16xf32>
    %21 = arith.addf %19, %20 : vector<16x16xf32>
    %c0_33 = arith.constant 0 : index
    %c2_34 = arith.constant 2 : index
    %c0_35 = arith.constant 0 : index
    %c0_36 = arith.constant 0 : index
    %22 = vector.load %arg1[%c0_33, %c2_34, %c0_35, %c0_36] : memref<1x8x4x16xf32, #tpu.memory_space<vmem>>, vector<1x1x4x16xf32>
    %23 = vector.shape_cast %22 : vector<1x1x4x16xf32> to vector<4x16xf32>
    %cst_37 = arith.constant dense<0.000000e+00> : vector<8x16xf32>
    %24 = tpu.matmul %0, %23, %cst_37 {dimension_numbers = #tpu.dot_dimension_numbers<[1], [0], [0], [1], [0, 0, 1, 1], [], []>} : vector<8x4xf32>, vector<4x16xf32>, vector<8x16xf32> -> vector<8x16xf32>
    %25 = vector.broadcast %1 : vector<8x1xf32> to vector<8x16xf32>
    %26 = arith.addf %24, %25 : vector<8x16xf32>
    %27 = vector.extract_strided_slice %21 {offsets = [0, 0], sizes = [8, 16], strides = [1, 1]} : vector<16x16xf32> to vector<8x16xf32>
    %28 = arith.addf %27, %26 : vector<8x16xf32>
    %29 = vector.extract_strided_slice %21 {offsets = [8, 0], sizes = [8, 16], strides = [1, 1]} : vector<16x16xf32> to vector<8x16xf32>
    %30 = arith.negf %29 : vector<8x16xf32>
    %31 = math.exp %30 : vector<8x16xf32>
    %cst_38 = arith.constant 1.000000e+00 : f32
    %32 = vector.broadcast %cst_38 : f32 to vector<8x16xf32>
    %33 = arith.addf %32, %31 : vector<8x16xf32>
    %34 = arith.divf %32, %33 : vector<8x16xf32>
    %35 = arith.mulf %28, %34 : vector<8x16xf32>
    %cst_39 = arith.constant dense<0.000000e+00> : vector<24x16xf32>
    %36 = tpu.matmul %4, %35, %cst_39 {dimension_numbers = #tpu.dot_dimension_numbers<[1], [0], [0], [1], [0, 0, 1, 1], [], []>} : vector<24x8xf32>, vector<8x16xf32>, vector<24x16xf32> -> vector<24x16xf32>
    %cst_40 = arith.constant 0.000000e+00 : f32
    %37 = vector.broadcast %cst_40 : f32 to vector<8x16xf32>
    %38 = vector.extract_strided_slice %36 {offsets = [0, 0], sizes = [8, 16], strides = [1, 1]} : vector<24x16xf32> to vector<8x16xf32>
    %c0_41 = arith.constant 0 : index
    %c0_42 = arith.constant 0 : index
    %c0_43 = arith.constant 0 : index
    %39 = vector.load %arg7[%c0_41, %c0_42, %c0_43] : memref<3x16x16xf32, #tpu.memory_space<vmem>>, vector<1x16x16xf32>
    %40 = vector.shape_cast %39 : vector<1x16x16xf32> to vector<16x16xf32>
    %cst_44 = arith.constant dense<0.000000e+00> : vector<8x16xf32>
    %41 = tpu.matmul %38, %40, %cst_44 {dimension_numbers = #tpu.dot_dimension_numbers<[1], [0], [0], [1], [0, 0, 1, 1], [], []>} : vector<8x16xf32>, vector<16x16xf32>, vector<8x16xf32> -> vector<8x16xf32>
    %42 = arith.addf %37, %41 : vector<8x16xf32>
    %43 = vector.extract_strided_slice %36 {offsets = [8, 0], sizes = [8, 16], strides = [1, 1]} : vector<24x16xf32> to vector<8x16xf32>
    %c1_45 = arith.constant 1 : index
    %c0_46 = arith.constant 0 : index
    %c0_47 = arith.constant 0 : index
    %44 = vector.load %arg7[%c1_45, %c0_46, %c0_47] : memref<3x16x16xf32, #tpu.memory_space<vmem>>, vector<1x16x16xf32>
    %45 = vector.shape_cast %44 : vector<1x16x16xf32> to vector<16x16xf32>
    %cst_48 = arith.constant dense<0.000000e+00> : vector<8x16xf32>
    %46 = tpu.matmul %43, %45, %cst_48 {dimension_numbers = #tpu.dot_dimension_numbers<[1], [0], [0], [1], [0, 0, 1, 1], [], []>} : vector<8x16xf32>, vector<16x16xf32>, vector<8x16xf32> -> vector<8x16xf32>
    %47 = arith.addf %42, %46 : vector<8x16xf32>
    %48 = vector.extract_strided_slice %36 {offsets = [16, 0], sizes = [8, 16], strides = [1, 1]} : vector<24x16xf32> to vector<8x16xf32>
    %c2_49 = arith.constant 2 : index
    %c0_50 = arith.constant 0 : index
    %c0_51 = arith.constant 0 : index
    %49 = vector.load %arg7[%c2_49, %c0_50, %c0_51] : memref<3x16x16xf32, #tpu.memory_space<vmem>>, vector<1x16x16xf32>
    %50 = vector.shape_cast %49 : vector<1x16x16xf32> to vector<16x16xf32>
    %cst_52 = arith.constant dense<0.000000e+00> : vector<8x16xf32>
    %51 = tpu.matmul %48, %50, %cst_52 {dimension_numbers = #tpu.dot_dimension_numbers<[1], [0], [0], [1], [0, 0, 1, 1], [], []>} : vector<8x16xf32>, vector<16x16xf32>, vector<8x16xf32> -> vector<8x16xf32>
    %52 = arith.addf %47, %51 : vector<8x16xf32>
    %53 = vector.broadcast %5 : vector<8x1xf32> to vector<8x16xf32>
    %54 = arith.addf %52, %53 : vector<8x16xf32>
    %55 = arith.addf %54, %35 : vector<8x16xf32>
    %cst_53 = arith.constant 0.000000e+00 : f32
    %56 = vector.broadcast %cst_53 : f32 to vector<8x16xf32>
    %57 = arith.maximumf %55, %56 : vector<8x16xf32>
    %c0_54 = arith.constant 0 : index
    %c1_55 = arith.constant 1 : index
    %c0_56 = arith.constant 0 : index
    %c0_57 = arith.constant 0 : index
    %58 = vector.load %arg1[%c0_54, %c1_55, %c0_56, %c0_57] : memref<1x8x4x16xf32, #tpu.memory_space<vmem>>, vector<1x1x4x16xf32>
    %59 = vector.shape_cast %58 : vector<1x1x4x16xf32> to vector<4x16xf32>
    %c0_58 = arith.constant 0 : index
    %c2_59 = arith.constant 2 : index
    %c0_60 = arith.constant 0 : index
    %c0_61 = arith.constant 0 : index
    %60 = vector.load %arg1[%c0_58, %c2_59, %c0_60, %c0_61] : memref<1x8x4x16xf32, #tpu.memory_space<vmem>>, vector<1x1x4x16xf32>
    %61 = vector.shape_cast %60 : vector<1x1x4x16xf32> to vector<4x16xf32>
    %c0_62 = arith.constant 0 : index
    %c3 = arith.constant 3 : index
    %c0_63 = arith.constant 0 : index
    %c0_64 = arith.constant 0 : index
    %62 = vector.load %arg1[%c0_62, %c3, %c0_63, %c0_64] : memref<1x8x4x16xf32, #tpu.memory_space<vmem>>, vector<1x1x4x16xf32>
    %63 = vector.shape_cast %62 : vector<1x1x4x16xf32> to vector<4x16xf32>
    %64 = tpu.concatenate %59, %61, %63 in 0 : vector<4x16xf32>, vector<4x16xf32>, vector<4x16xf32> -> vector<12x16xf32>
    %cst_65 = arith.constant dense<0.000000e+00> : vector<16x16xf32>
    %65 = tpu.matmul %2, %64, %cst_65 {dimension_numbers = #tpu.dot_dimension_numbers<[1], [0], [0], [1], [0, 0, 1, 1], [], []>} : vector<16x12xf32>, vector<12x16xf32>, vector<16x16xf32> -> vector<16x16xf32>
    %66 = vector.broadcast %3 : vector<16x1xf32> to vector<16x16xf32>
    %67 = arith.addf %65, %66 : vector<16x16xf32>
    %c0_66 = arith.constant 0 : index
    %c3_67 = arith.constant 3 : index
    %c0_68 = arith.constant 0 : index
    %c0_69 = arith.constant 0 : index
    %68 = vector.load %arg1[%c0_66, %c3_67, %c0_68, %c0_69] : memref<1x8x4x16xf32, #tpu.memory_space<vmem>>, vector<1x1x4x16xf32>
    %69 = vector.shape_cast %68 : vector<1x1x4x16xf32> to vector<4x16xf32>
    %cst_70 = arith.constant dense<0.000000e+00> : vector<8x16xf32>
    %70 = tpu.matmul %0, %69, %cst_70 {dimension_numbers = #tpu.dot_dimension_numbers<[1], [0], [0], [1], [0, 0, 1, 1], [], []>} : vector<8x4xf32>, vector<4x16xf32>, vector<8x16xf32> -> vector<8x16xf32>
    %71 = vector.broadcast %1 : vector<8x1xf32> to vector<8x16xf32>
    %72 = arith.addf %70, %71 : vector<8x16xf32>
    %73 = vector.extract_strided_slice %67 {offsets = [0, 0], sizes = [8, 16], strides = [1, 1]} : vector<16x16xf32> to vector<8x16xf32>
    %74 = arith.addf %73, %72 : vector<8x16xf32>
    %75 = vector.extract_strided_slice %67 {offsets = [8, 0], sizes = [8, 16], strides = [1, 1]} : vector<16x16xf32> to vector<8x16xf32>
    %76 = arith.negf %75 : vector<8x16xf32>
    %77 = math.exp %76 : vector<8x16xf32>
    %cst_71 = arith.constant 1.000000e+00 : f32
    %78 = vector.broadcast %cst_71 : f32 to vector<8x16xf32>
    %79 = arith.addf %78, %77 : vector<8x16xf32>
    %80 = arith.divf %78, %79 : vector<8x16xf32>
    %81 = arith.mulf %74, %80 : vector<8x16xf32>
    %cst_72 = arith.constant dense<0.000000e+00> : vector<24x16xf32>
    %82 = tpu.matmul %4, %81, %cst_72 {dimension_numbers = #tpu.dot_dimension_numbers<[1], [0], [0], [1], [0, 0, 1, 1], [], []>} : vector<24x8xf32>, vector<8x16xf32>, vector<24x16xf32> -> vector<24x16xf32>
    %cst_73 = arith.constant 0.000000e+00 : f32
    %83 = vector.broadcast %cst_73 : f32 to vector<8x16xf32>
    %84 = vector.extract_strided_slice %82 {offsets = [0, 0], sizes = [8, 16], strides = [1, 1]} : vector<24x16xf32> to vector<8x16xf32>
    %c0_74 = arith.constant 0 : index
    %c0_75 = arith.constant 0 : index
    %c0_76 = arith.constant 0 : index
    %85 = vector.load %arg7[%c0_74, %c0_75, %c0_76] : memref<3x16x16xf32, #tpu.memory_space<vmem>>, vector<1x16x16xf32>
    %86 = vector.shape_cast %85 : vector<1x16x16xf32> to vector<16x16xf32>
    %cst_77 = arith.constant dense<0.000000e+00> : vector<8x16xf32>
    %87 = tpu.matmul %84, %86, %cst_77 {dimension_numbers = #tpu.dot_dimension_numbers<[1], [0], [0], [1], [0, 0, 1, 1], [], []>} : vector<8x16xf32>, vector<16x16xf32>, vector<8x16xf32> -> vector<8x16xf32>
    %88 = arith.addf %83, %87 : vector<8x16xf32>
    %89 = vector.extract_strided_slice %82 {offsets = [8, 0], sizes = [8, 16], strides = [1, 1]} : vector<24x16xf32> to vector<8x16xf32>
    %c1_78 = arith.constant 1 : index
    %c0_79 = arith.constant 0 : index
    %c0_80 = arith.constant 0 : index
    %90 = vector.load %arg7[%c1_78, %c0_79, %c0_80] : memref<3x16x16xf32, #tpu.memory_space<vmem>>, vector<1x16x16xf32>
    %91 = vector.shape_cast %90 : vector<1x16x16xf32> to vector<16x16xf32>
    %cst_81 = arith.constant dense<0.000000e+00> : vector<8x16xf32>
    %92 = tpu.matmul %89, %91, %cst_81 {dimension_numbers = #tpu.dot_dimension_numbers<[1], [0], [0], [1], [0, 0, 1, 1], [], []>} : vector<8x16xf32>, vector<16x16xf32>, vector<8x16xf32> -> vector<8x16xf32>
    %93 = arith.addf %88, %92 : vector<8x16xf32>
    %94 = vector.extract_strided_slice %82 {offsets = [16, 0], sizes = [8, 16], strides = [1, 1]} : vector<24x16xf32> to vector<8x16xf32>
    %c2_82 = arith.constant 2 : index
    %c0_83 = arith.constant 0 : index
    %c0_84 = arith.constant 0 : index
    %95 = vector.load %arg7[%c2_82, %c0_83, %c0_84] : memref<3x16x16xf32, #tpu.memory_space<vmem>>, vector<1x16x16xf32>
    %96 = vector.shape_cast %95 : vector<1x16x16xf32> to vector<16x16xf32>
    %cst_85 = arith.constant dense<0.000000e+00> : vector<8x16xf32>
    %97 = tpu.matmul %94, %96, %cst_85 {dimension_numbers = #tpu.dot_dimension_numbers<[1], [0], [0], [1], [0, 0, 1, 1], [], []>} : vector<8x16xf32>, vector<16x16xf32>, vector<8x16xf32> -> vector<8x16xf32>
    %98 = arith.addf %93, %97 : vector<8x16xf32>
    %99 = vector.broadcast %5 : vector<8x1xf32> to vector<8x16xf32>
    %100 = arith.addf %98, %99 : vector<8x16xf32>
    %101 = arith.addf %100, %81 : vector<8x16xf32>
    %cst_86 = arith.constant 0.000000e+00 : f32
    %102 = vector.broadcast %cst_86 : f32 to vector<8x16xf32>
    %103 = arith.maximumf %101, %102 : vector<8x16xf32>
    %c0_87 = arith.constant 0 : index
    %c2_88 = arith.constant 2 : index
    %c0_89 = arith.constant 0 : index
    %c0_90 = arith.constant 0 : index
    %104 = vector.load %arg1[%c0_87, %c2_88, %c0_89, %c0_90] : memref<1x8x4x16xf32, #tpu.memory_space<vmem>>, vector<1x1x4x16xf32>
    %105 = vector.shape_cast %104 : vector<1x1x4x16xf32> to vector<4x16xf32>
    %c0_91 = arith.constant 0 : index
    %c3_92 = arith.constant 3 : index
    %c0_93 = arith.constant 0 : index
    %c0_94 = arith.constant 0 : index
    %106 = vector.load %arg1[%c0_91, %c3_92, %c0_93, %c0_94] : memref<1x8x4x16xf32, #tpu.memory_space<vmem>>, vector<1x1x4x16xf32>
    %107 = vector.shape_cast %106 : vector<1x1x4x16xf32> to vector<4x16xf32>
    %c0_95 = arith.constant 0 : index
    %c4 = arith.constant 4 : index
    %c0_96 = arith.constant 0 : index
    %c0_97 = arith.constant 0 : index
    %108 = vector.load %arg1[%c0_95, %c4, %c0_96, %c0_97] : memref<1x8x4x16xf32, #tpu.memory_space<vmem>>, vector<1x1x4x16xf32>
    %109 = vector.shape_cast %108 : vector<1x1x4x16xf32> to vector<4x16xf32>
    %110 = tpu.concatenate %105, %107, %109 in 0 : vector<4x16xf32>, vector<4x16xf32>, vector<4x16xf32> -> vector<12x16xf32>
    %cst_98 = arith.constant dense<0.000000e+00> : vector<16x16xf32>
    %111 = tpu.matmul %2, %110, %cst_98 {dimension_numbers = #tpu.dot_dimension_numbers<[1], [0], [0], [1], [0, 0, 1, 1], [], []>} : vector<16x12xf32>, vector<12x16xf32>, vector<16x16xf32> -> vector<16x16xf32>
    %112 = vector.broadcast %3 : vector<16x1xf32> to vector<16x16xf32>
    %113 = arith.addf %111, %112 : vector<16x16xf32>
    %c0_99 = arith.constant 0 : index
    %c4_100 = arith.constant 4 : index
    %c0_101 = arith.constant 0 : index
    %c0_102 = arith.constant 0 : index
    %114 = vector.load %arg1[%c0_99, %c4_100, %c0_101, %c0_102] : memref<1x8x4x16xf32, #tpu.memory_space<vmem>>, vector<1x1x4x16xf32>
    %115 = vector.shape_cast %114 : vector<1x1x4x16xf32> to vector<4x16xf32>
    %cst_103 = arith.constant dense<0.000000e+00> : vector<8x16xf32>
    %116 = tpu.matmul %0, %115, %cst_103 {dimension_numbers = #tpu.dot_dimension_numbers<[1], [0], [0], [1], [0, 0, 1, 1], [], []>} : vector<8x4xf32>, vector<4x16xf32>, vector<8x16xf32> -> vector<8x16xf32>
    %117 = vector.broadcast %1 : vector<8x1xf32> to vector<8x16xf32>
    %118 = arith.addf %116, %117 : vector<8x16xf32>
    %119 = vector.extract_strided_slice %113 {offsets = [0, 0], sizes = [8, 16], strides = [1, 1]} : vector<16x16xf32> to vector<8x16xf32>
    %120 = arith.addf %119, %118 : vector<8x16xf32>
    %121 = vector.extract_strided_slice %113 {offsets = [8, 0], sizes = [8, 16], strides = [1, 1]} : vector<16x16xf32> to vector<8x16xf32>
    %122 = arith.negf %121 : vector<8x16xf32>
    %123 = math.exp %122 : vector<8x16xf32>
    %cst_104 = arith.constant 1.000000e+00 : f32
    %124 = vector.broadcast %cst_104 : f32 to vector<8x16xf32>
    %125 = arith.addf %124, %123 : vector<8x16xf32>
    %126 = arith.divf %124, %125 : vector<8x16xf32>
    %127 = arith.mulf %120, %126 : vector<8x16xf32>
    %cst_105 = arith.constant dense<0.000000e+00> : vector<24x16xf32>
    %128 = tpu.matmul %4, %127, %cst_105 {dimension_numbers = #tpu.dot_dimension_numbers<[1], [0], [0], [1], [0, 0, 1, 1], [], []>} : vector<24x8xf32>, vector<8x16xf32>, vector<24x16xf32> -> vector<24x16xf32>
    %cst_106 = arith.constant 0.000000e+00 : f32
    %129 = vector.broadcast %cst_106 : f32 to vector<8x16xf32>
    %130 = vector.extract_strided_slice %128 {offsets = [0, 0], sizes = [8, 16], strides = [1, 1]} : vector<24x16xf32> to vector<8x16xf32>
    %c0_107 = arith.constant 0 : index
    %c0_108 = arith.constant 0 : index
    %c0_109 = arith.constant 0 : index
    %131 = vector.load %arg7[%c0_107, %c0_108, %c0_109] : memref<3x16x16xf32, #tpu.memory_space<vmem>>, vector<1x16x16xf32>
    %132 = vector.shape_cast %131 : vector<1x16x16xf32> to vector<16x16xf32>
    %cst_110 = arith.constant dense<0.000000e+00> : vector<8x16xf32>
    %133 = tpu.matmul %130, %132, %cst_110 {dimension_numbers = #tpu.dot_dimension_numbers<[1], [0], [0], [1], [0, 0, 1, 1], [], []>} : vector<8x16xf32>, vector<16x16xf32>, vector<8x16xf32> -> vector<8x16xf32>
    %134 = arith.addf %129, %133 : vector<8x16xf32>
    %135 = vector.extract_strided_slice %128 {offsets = [8, 0], sizes = [8, 16], strides = [1, 1]} : vector<24x16xf32> to vector<8x16xf32>
    %c1_111 = arith.constant 1 : index
    %c0_112 = arith.constant 0 : index
    %c0_113 = arith.constant 0 : index
    %136 = vector.load %arg7[%c1_111, %c0_112, %c0_113] : memref<3x16x16xf32, #tpu.memory_space<vmem>>, vector<1x16x16xf32>
    %137 = vector.shape_cast %136 : vector<1x16x16xf32> to vector<16x16xf32>
    %cst_114 = arith.constant dense<0.000000e+00> : vector<8x16xf32>
    %138 = tpu.matmul %135, %137, %cst_114 {dimension_numbers = #tpu.dot_dimension_numbers<[1], [0], [0], [1], [0, 0, 1, 1], [], []>} : vector<8x16xf32>, vector<16x16xf32>, vector<8x16xf32> -> vector<8x16xf32>
    %139 = arith.addf %134, %138 : vector<8x16xf32>
    %140 = vector.extract_strided_slice %128 {offsets = [16, 0], sizes = [8, 16], strides = [1, 1]} : vector<24x16xf32> to vector<8x16xf32>
    %c2_115 = arith.constant 2 : index
    %c0_116 = arith.constant 0 : index
    %c0_117 = arith.constant 0 : index
    %141 = vector.load %arg7[%c2_115, %c0_116, %c0_117] : memref<3x16x16xf32, #tpu.memory_space<vmem>>, vector<1x16x16xf32>
    %142 = vector.shape_cast %141 : vector<1x16x16xf32> to vector<16x16xf32>
    %cst_118 = arith.constant dense<0.000000e+00> : vector<8x16xf32>
    %143 = tpu.matmul %140, %142, %cst_118 {dimension_numbers = #tpu.dot_dimension_numbers<[1], [0], [0], [1], [0, 0, 1, 1], [], []>} : vector<8x16xf32>, vector<16x16xf32>, vector<8x16xf32> -> vector<8x16xf32>
    %144 = arith.addf %139, %143 : vector<8x16xf32>
    %145 = vector.broadcast %5 : vector<8x1xf32> to vector<8x16xf32>
    %146 = arith.addf %144, %145 : vector<8x16xf32>
    %147 = arith.addf %146, %127 : vector<8x16xf32>
    %cst_119 = arith.constant 0.000000e+00 : f32
    %148 = vector.broadcast %cst_119 : f32 to vector<8x16xf32>
    %149 = arith.maximumf %147, %148 : vector<8x16xf32>
    %c0_120 = arith.constant 0 : index
    %c3_121 = arith.constant 3 : index
    %c0_122 = arith.constant 0 : index
    %c0_123 = arith.constant 0 : index
    %150 = vector.load %arg1[%c0_120, %c3_121, %c0_122, %c0_123] : memref<1x8x4x16xf32, #tpu.memory_space<vmem>>, vector<1x1x4x16xf32>
    %151 = vector.shape_cast %150 : vector<1x1x4x16xf32> to vector<4x16xf32>
    %c0_124 = arith.constant 0 : index
    %c4_125 = arith.constant 4 : index
    %c0_126 = arith.constant 0 : index
    %c0_127 = arith.constant 0 : index
    %152 = vector.load %arg1[%c0_124, %c4_125, %c0_126, %c0_127] : memref<1x8x4x16xf32, #tpu.memory_space<vmem>>, vector<1x1x4x16xf32>
    %153 = vector.shape_cast %152 : vector<1x1x4x16xf32> to vector<4x16xf32>
    %c0_128 = arith.constant 0 : index
    %c5 = arith.constant 5 : index
    %c0_129 = arith.constant 0 : index
    %c0_130 = arith.constant 0 : index
    %154 = vector.load %arg1[%c0_128, %c5, %c0_129, %c0_130] : memref<1x8x4x16xf32, #tpu.memory_space<vmem>>, vector<1x1x4x16xf32>
    %155 = vector.shape_cast %154 : vector<1x1x4x16xf32> to vector<4x16xf32>
    %156 = tpu.concatenate %151, %153, %155 in 0 : vector<4x16xf32>, vector<4x16xf32>, vector<4x16xf32> -> vector<12x16xf32>
    %cst_131 = arith.constant dense<0.000000e+00> : vector<16x16xf32>
    %157 = tpu.matmul %2, %156, %cst_131 {dimension_numbers = #tpu.dot_dimension_numbers<[1], [0], [0], [1], [0, 0, 1, 1], [], []>} : vector<16x12xf32>, vector<12x16xf32>, vector<16x16xf32> -> vector<16x16xf32>
    %158 = vector.broadcast %3 : vector<16x1xf32> to vector<16x16xf32>
    %159 = arith.addf %157, %158 : vector<16x16xf32>
    %c0_132 = arith.constant 0 : index
    %c5_133 = arith.constant 5 : index
    %c0_134 = arith.constant 0 : index
    %c0_135 = arith.constant 0 : index
    %160 = vector.load %arg1[%c0_132, %c5_133, %c0_134, %c0_135] : memref<1x8x4x16xf32, #tpu.memory_space<vmem>>, vector<1x1x4x16xf32>
    %161 = vector.shape_cast %160 : vector<1x1x4x16xf32> to vector<4x16xf32>
    %cst_136 = arith.constant dense<0.000000e+00> : vector<8x16xf32>
    %162 = tpu.matmul %0, %161, %cst_136 {dimension_numbers = #tpu.dot_dimension_numbers<[1], [0], [0], [1], [0, 0, 1, 1], [], []>} : vector<8x4xf32>, vector<4x16xf32>, vector<8x16xf32> -> vector<8x16xf32>
    %163 = vector.broadcast %1 : vector<8x1xf32> to vector<8x16xf32>
    %164 = arith.addf %162, %163 : vector<8x16xf32>
    %165 = vector.extract_strided_slice %159 {offsets = [0, 0], sizes = [8, 16], strides = [1, 1]} : vector<16x16xf32> to vector<8x16xf32>
    %166 = arith.addf %165, %164 : vector<8x16xf32>
    %167 = vector.extract_strided_slice %159 {offsets = [8, 0], sizes = [8, 16], strides = [1, 1]} : vector<16x16xf32> to vector<8x16xf32>
    %168 = arith.negf %167 : vector<8x16xf32>
    %169 = math.exp %168 : vector<8x16xf32>
    %cst_137 = arith.constant 1.000000e+00 : f32
    %170 = vector.broadcast %cst_137 : f32 to vector<8x16xf32>
    %171 = arith.addf %170, %169 : vector<8x16xf32>
    %172 = arith.divf %170, %171 : vector<8x16xf32>
    %173 = arith.mulf %166, %172 : vector<8x16xf32>
    %cst_138 = arith.constant dense<0.000000e+00> : vector<24x16xf32>
    %174 = tpu.matmul %4, %173, %cst_138 {dimension_numbers = #tpu.dot_dimension_numbers<[1], [0], [0], [1], [0, 0, 1, 1], [], []>} : vector<24x8xf32>, vector<8x16xf32>, vector<24x16xf32> -> vector<24x16xf32>
    %cst_139 = arith.constant 0.000000e+00 : f32
    %175 = vector.broadcast %cst_139 : f32 to vector<8x16xf32>
    %176 = vector.extract_strided_slice %174 {offsets = [0, 0], sizes = [8, 16], strides = [1, 1]} : vector<24x16xf32> to vector<8x16xf32>
    %c0_140 = arith.constant 0 : index
    %c0_141 = arith.constant 0 : index
    %c0_142 = arith.constant 0 : index
    %177 = vector.load %arg7[%c0_140, %c0_141, %c0_142] : memref<3x16x16xf32, #tpu.memory_space<vmem>>, vector<1x16x16xf32>
    %178 = vector.shape_cast %177 : vector<1x16x16xf32> to vector<16x16xf32>
    %cst_143 = arith.constant dense<0.000000e+00> : vector<8x16xf32>
    %179 = tpu.matmul %176, %178, %cst_143 {dimension_numbers = #tpu.dot_dimension_numbers<[1], [0], [0], [1], [0, 0, 1, 1], [], []>} : vector<8x16xf32>, vector<16x16xf32>, vector<8x16xf32> -> vector<8x16xf32>
    %180 = arith.addf %175, %179 : vector<8x16xf32>
    %181 = vector.extract_strided_slice %174 {offsets = [8, 0], sizes = [8, 16], strides = [1, 1]} : vector<24x16xf32> to vector<8x16xf32>
    %c1_144 = arith.constant 1 : index
    %c0_145 = arith.constant 0 : index
    %c0_146 = arith.constant 0 : index
    %182 = vector.load %arg7[%c1_144, %c0_145, %c0_146] : memref<3x16x16xf32, #tpu.memory_space<vmem>>, vector<1x16x16xf32>
    %183 = vector.shape_cast %182 : vector<1x16x16xf32> to vector<16x16xf32>
    %cst_147 = arith.constant dense<0.000000e+00> : vector<8x16xf32>
    %184 = tpu.matmul %181, %183, %cst_147 {dimension_numbers = #tpu.dot_dimension_numbers<[1], [0], [0], [1], [0, 0, 1, 1], [], []>} : vector<8x16xf32>, vector<16x16xf32>, vector<8x16xf32> -> vector<8x16xf32>
    %185 = arith.addf %180, %184 : vector<8x16xf32>
    %186 = vector.extract_strided_slice %174 {offsets = [16, 0], sizes = [8, 16], strides = [1, 1]} : vector<24x16xf32> to vector<8x16xf32>
    %c2_148 = arith.constant 2 : index
    %c0_149 = arith.constant 0 : index
    %c0_150 = arith.constant 0 : index
    %187 = vector.load %arg7[%c2_148, %c0_149, %c0_150] : memref<3x16x16xf32, #tpu.memory_space<vmem>>, vector<1x16x16xf32>
    %188 = vector.shape_cast %187 : vector<1x16x16xf32> to vector<16x16xf32>
    %cst_151 = arith.constant dense<0.000000e+00> : vector<8x16xf32>
    %189 = tpu.matmul %186, %188, %cst_151 {dimension_numbers = #tpu.dot_dimension_numbers<[1], [0], [0], [1], [0, 0, 1, 1], [], []>} : vector<8x16xf32>, vector<16x16xf32>, vector<8x16xf32> -> vector<8x16xf32>
    %190 = arith.addf %185, %189 : vector<8x16xf32>
    %191 = vector.broadcast %5 : vector<8x1xf32> to vector<8x16xf32>
    %192 = arith.addf %190, %191 : vector<8x16xf32>
    %193 = arith.addf %192, %173 : vector<8x16xf32>
    %cst_152 = arith.constant 0.000000e+00 : f32
    %194 = vector.broadcast %cst_152 : f32 to vector<8x16xf32>
    %195 = arith.maximumf %193, %194 : vector<8x16xf32>
    %c0_153 = arith.constant 0 : index
    %c4_154 = arith.constant 4 : index
    %c0_155 = arith.constant 0 : index
    %c0_156 = arith.constant 0 : index
    %196 = vector.load %arg1[%c0_153, %c4_154, %c0_155, %c0_156] : memref<1x8x4x16xf32, #tpu.memory_space<vmem>>, vector<1x1x4x16xf32>
    %197 = vector.shape_cast %196 : vector<1x1x4x16xf32> to vector<4x16xf32>
    %c0_157 = arith.constant 0 : index
    %c5_158 = arith.constant 5 : index
    %c0_159 = arith.constant 0 : index
    %c0_160 = arith.constant 0 : index
    %198 = vector.load %arg1[%c0_157, %c5_158, %c0_159, %c0_160] : memref<1x8x4x16xf32, #tpu.memory_space<vmem>>, vector<1x1x4x16xf32>
    %199 = vector.shape_cast %198 : vector<1x1x4x16xf32> to vector<4x16xf32>
    %c0_161 = arith.constant 0 : index
    %c6 = arith.constant 6 : index
    %c0_162 = arith.constant 0 : index
    %c0_163 = arith.constant 0 : index
    %200 = vector.load %arg1[%c0_161, %c6, %c0_162, %c0_163] : memref<1x8x4x16xf32, #tpu.memory_space<vmem>>, vector<1x1x4x16xf32>
    %201 = vector.shape_cast %200 : vector<1x1x4x16xf32> to vector<4x16xf32>
    %202 = tpu.concatenate %197, %199, %201 in 0 : vector<4x16xf32>, vector<4x16xf32>, vector<4x16xf32> -> vector<12x16xf32>
    %cst_164 = arith.constant dense<0.000000e+00> : vector<16x16xf32>
    %203 = tpu.matmul %2, %202, %cst_164 {dimension_numbers = #tpu.dot_dimension_numbers<[1], [0], [0], [1], [0, 0, 1, 1], [], []>} : vector<16x12xf32>, vector<12x16xf32>, vector<16x16xf32> -> vector<16x16xf32>
    %204 = vector.broadcast %3 : vector<16x1xf32> to vector<16x16xf32>
    %205 = arith.addf %203, %204 : vector<16x16xf32>
    %c0_165 = arith.constant 0 : index
    %c6_166 = arith.constant 6 : index
    %c0_167 = arith.constant 0 : index
    %c0_168 = arith.constant 0 : index
    %206 = vector.load %arg1[%c0_165, %c6_166, %c0_167, %c0_168] : memref<1x8x4x16xf32, #tpu.memory_space<vmem>>, vector<1x1x4x16xf32>
    %207 = vector.shape_cast %206 : vector<1x1x4x16xf32> to vector<4x16xf32>
    %cst_169 = arith.constant dense<0.000000e+00> : vector<8x16xf32>
    %208 = tpu.matmul %0, %207, %cst_169 {dimension_numbers = #tpu.dot_dimension_numbers<[1], [0], [0], [1], [0, 0, 1, 1], [], []>} : vector<8x4xf32>, vector<4x16xf32>, vector<8x16xf32> -> vector<8x16xf32>
    %209 = vector.broadcast %1 : vector<8x1xf32> to vector<8x16xf32>
    %210 = arith.addf %208, %209 : vector<8x16xf32>
    %211 = vector.extract_strided_slice %205 {offsets = [0, 0], sizes = [8, 16], strides = [1, 1]} : vector<16x16xf32> to vector<8x16xf32>
    %212 = arith.addf %211, %210 : vector<8x16xf32>
    %213 = vector.extract_strided_slice %205 {offsets = [8, 0], sizes = [8, 16], strides = [1, 1]} : vector<16x16xf32> to vector<8x16xf32>
    %214 = arith.negf %213 : vector<8x16xf32>
    %215 = math.exp %214 : vector<8x16xf32>
    %cst_170 = arith.constant 1.000000e+00 : f32
    %216 = vector.broadcast %cst_170 : f32 to vector<8x16xf32>
    %217 = arith.addf %216, %215 : vector<8x16xf32>
    %218 = arith.divf %216, %217 : vector<8x16xf32>
    %219 = arith.mulf %212, %218 : vector<8x16xf32>
    %cst_171 = arith.constant dense<0.000000e+00> : vector<24x16xf32>
    %220 = tpu.matmul %4, %219, %cst_171 {dimension_numbers = #tpu.dot_dimension_numbers<[1], [0], [0], [1], [0, 0, 1, 1], [], []>} : vector<24x8xf32>, vector<8x16xf32>, vector<24x16xf32> -> vector<24x16xf32>
    %cst_172 = arith.constant 0.000000e+00 : f32
    %221 = vector.broadcast %cst_172 : f32 to vector<8x16xf32>
    %222 = vector.extract_strided_slice %220 {offsets = [0, 0], sizes = [8, 16], strides = [1, 1]} : vector<24x16xf32> to vector<8x16xf32>
    %c0_173 = arith.constant 0 : index
    %c0_174 = arith.constant 0 : index
    %c0_175 = arith.constant 0 : index
    %223 = vector.load %arg7[%c0_173, %c0_174, %c0_175] : memref<3x16x16xf32, #tpu.memory_space<vmem>>, vector<1x16x16xf32>
    %224 = vector.shape_cast %223 : vector<1x16x16xf32> to vector<16x16xf32>
    %cst_176 = arith.constant dense<0.000000e+00> : vector<8x16xf32>
    %225 = tpu.matmul %222, %224, %cst_176 {dimension_numbers = #tpu.dot_dimension_numbers<[1], [0], [0], [1], [0, 0, 1, 1], [], []>} : vector<8x16xf32>, vector<16x16xf32>, vector<8x16xf32> -> vector<8x16xf32>
    %226 = arith.addf %221, %225 : vector<8x16xf32>
    %227 = vector.extract_strided_slice %220 {offsets = [8, 0], sizes = [8, 16], strides = [1, 1]} : vector<24x16xf32> to vector<8x16xf32>
    %c1_177 = arith.constant 1 : index
    %c0_178 = arith.constant 0 : index
    %c0_179 = arith.constant 0 : index
    %228 = vector.load %arg7[%c1_177, %c0_178, %c0_179] : memref<3x16x16xf32, #tpu.memory_space<vmem>>, vector<1x16x16xf32>
    %229 = vector.shape_cast %228 : vector<1x16x16xf32> to vector<16x16xf32>
    %cst_180 = arith.constant dense<0.000000e+00> : vector<8x16xf32>
    %230 = tpu.matmul %227, %229, %cst_180 {dimension_numbers = #tpu.dot_dimension_numbers<[1], [0], [0], [1], [0, 0, 1, 1], [], []>} : vector<8x16xf32>, vector<16x16xf32>, vector<8x16xf32> -> vector<8x16xf32>
    %231 = arith.addf %226, %230 : vector<8x16xf32>
    %232 = vector.extract_strided_slice %220 {offsets = [16, 0], sizes = [8, 16], strides = [1, 1]} : vector<24x16xf32> to vector<8x16xf32>
    %c2_181 = arith.constant 2 : index
    %c0_182 = arith.constant 0 : index
    %c0_183 = arith.constant 0 : index
    %233 = vector.load %arg7[%c2_181, %c0_182, %c0_183] : memref<3x16x16xf32, #tpu.memory_space<vmem>>, vector<1x16x16xf32>
    %234 = vector.shape_cast %233 : vector<1x16x16xf32> to vector<16x16xf32>
    %cst_184 = arith.constant dense<0.000000e+00> : vector<8x16xf32>
    %235 = tpu.matmul %232, %234, %cst_184 {dimension_numbers = #tpu.dot_dimension_numbers<[1], [0], [0], [1], [0, 0, 1, 1], [], []>} : vector<8x16xf32>, vector<16x16xf32>, vector<8x16xf32> -> vector<8x16xf32>
    %236 = arith.addf %231, %235 : vector<8x16xf32>
    %237 = vector.broadcast %5 : vector<8x1xf32> to vector<8x16xf32>
    %238 = arith.addf %236, %237 : vector<8x16xf32>
    %239 = arith.addf %238, %219 : vector<8x16xf32>
    %cst_185 = arith.constant 0.000000e+00 : f32
    %240 = vector.broadcast %cst_185 : f32 to vector<8x16xf32>
    %241 = arith.maximumf %239, %240 : vector<8x16xf32>
    %c0_186 = arith.constant 0 : index
    %c5_187 = arith.constant 5 : index
    %c0_188 = arith.constant 0 : index
    %c0_189 = arith.constant 0 : index
    %242 = vector.load %arg1[%c0_186, %c5_187, %c0_188, %c0_189] : memref<1x8x4x16xf32, #tpu.memory_space<vmem>>, vector<1x1x4x16xf32>
    %243 = vector.shape_cast %242 : vector<1x1x4x16xf32> to vector<4x16xf32>
    %c0_190 = arith.constant 0 : index
    %c6_191 = arith.constant 6 : index
    %c0_192 = arith.constant 0 : index
    %c0_193 = arith.constant 0 : index
    %244 = vector.load %arg1[%c0_190, %c6_191, %c0_192, %c0_193] : memref<1x8x4x16xf32, #tpu.memory_space<vmem>>, vector<1x1x4x16xf32>
    %245 = vector.shape_cast %244 : vector<1x1x4x16xf32> to vector<4x16xf32>
    %c0_194 = arith.constant 0 : index
    %c7 = arith.constant 7 : index
    %c0_195 = arith.constant 0 : index
    %c0_196 = arith.constant 0 : index
    %246 = vector.load %arg1[%c0_194, %c7, %c0_195, %c0_196] : memref<1x8x4x16xf32, #tpu.memory_space<vmem>>, vector<1x1x4x16xf32>
    %247 = vector.shape_cast %246 : vector<1x1x4x16xf32> to vector<4x16xf32>
    %248 = tpu.concatenate %243, %245, %247 in 0 : vector<4x16xf32>, vector<4x16xf32>, vector<4x16xf32> -> vector<12x16xf32>
    %cst_197 = arith.constant dense<0.000000e+00> : vector<16x16xf32>
    %249 = tpu.matmul %2, %248, %cst_197 {dimension_numbers = #tpu.dot_dimension_numbers<[1], [0], [0], [1], [0, 0, 1, 1], [], []>} : vector<16x12xf32>, vector<12x16xf32>, vector<16x16xf32> -> vector<16x16xf32>
    %250 = vector.broadcast %3 : vector<16x1xf32> to vector<16x16xf32>
    %251 = arith.addf %249, %250 : vector<16x16xf32>
    %c0_198 = arith.constant 0 : index
    %c7_199 = arith.constant 7 : index
    %c0_200 = arith.constant 0 : index
    %c0_201 = arith.constant 0 : index
    %252 = vector.load %arg1[%c0_198, %c7_199, %c0_200, %c0_201] : memref<1x8x4x16xf32, #tpu.memory_space<vmem>>, vector<1x1x4x16xf32>
    %253 = vector.shape_cast %252 : vector<1x1x4x16xf32> to vector<4x16xf32>
    %cst_202 = arith.constant dense<0.000000e+00> : vector<8x16xf32>
    %254 = tpu.matmul %0, %253, %cst_202 {dimension_numbers = #tpu.dot_dimension_numbers<[1], [0], [0], [1], [0, 0, 1, 1], [], []>} : vector<8x4xf32>, vector<4x16xf32>, vector<8x16xf32> -> vector<8x16xf32>
    %255 = vector.broadcast %1 : vector<8x1xf32> to vector<8x16xf32>
    %256 = arith.addf %254, %255 : vector<8x16xf32>
    %257 = vector.extract_strided_slice %251 {offsets = [0, 0], sizes = [8, 16], strides = [1, 1]} : vector<16x16xf32> to vector<8x16xf32>
    %258 = arith.addf %257, %256 : vector<8x16xf32>
    %259 = vector.extract_strided_slice %251 {offsets = [8, 0], sizes = [8, 16], strides = [1, 1]} : vector<16x16xf32> to vector<8x16xf32>
    %260 = arith.negf %259 : vector<8x16xf32>
    %261 = math.exp %260 : vector<8x16xf32>
    %cst_203 = arith.constant 1.000000e+00 : f32
    %262 = vector.broadcast %cst_203 : f32 to vector<8x16xf32>
    %263 = arith.addf %262, %261 : vector<8x16xf32>
    %264 = arith.divf %262, %263 : vector<8x16xf32>
    %265 = arith.mulf %258, %264 : vector<8x16xf32>
    %cst_204 = arith.constant dense<0.000000e+00> : vector<24x16xf32>
    %266 = tpu.matmul %4, %265, %cst_204 {dimension_numbers = #tpu.dot_dimension_numbers<[1], [0], [0], [1], [0, 0, 1, 1], [], []>} : vector<24x8xf32>, vector<8x16xf32>, vector<24x16xf32> -> vector<24x16xf32>
    %cst_205 = arith.constant 0.000000e+00 : f32
    %267 = vector.broadcast %cst_205 : f32 to vector<8x16xf32>
    %268 = vector.extract_strided_slice %266 {offsets = [0, 0], sizes = [8, 16], strides = [1, 1]} : vector<24x16xf32> to vector<8x16xf32>
    %c0_206 = arith.constant 0 : index
    %c0_207 = arith.constant 0 : index
    %c0_208 = arith.constant 0 : index
    %269 = vector.load %arg7[%c0_206, %c0_207, %c0_208] : memref<3x16x16xf32, #tpu.memory_space<vmem>>, vector<1x16x16xf32>
    %270 = vector.shape_cast %269 : vector<1x16x16xf32> to vector<16x16xf32>
    %cst_209 = arith.constant dense<0.000000e+00> : vector<8x16xf32>
    %271 = tpu.matmul %268, %270, %cst_209 {dimension_numbers = #tpu.dot_dimension_numbers<[1], [0], [0], [1], [0, 0, 1, 1], [], []>} : vector<8x16xf32>, vector<16x16xf32>, vector<8x16xf32> -> vector<8x16xf32>
    %272 = arith.addf %267, %271 : vector<8x16xf32>
    %273 = vector.extract_strided_slice %266 {offsets = [8, 0], sizes = [8, 16], strides = [1, 1]} : vector<24x16xf32> to vector<8x16xf32>
    %c1_210 = arith.constant 1 : index
    %c0_211 = arith.constant 0 : index
    %c0_212 = arith.constant 0 : index
    %274 = vector.load %arg7[%c1_210, %c0_211, %c0_212] : memref<3x16x16xf32, #tpu.memory_space<vmem>>, vector<1x16x16xf32>
    %275 = vector.shape_cast %274 : vector<1x16x16xf32> to vector<16x16xf32>
    %cst_213 = arith.constant dense<0.000000e+00> : vector<8x16xf32>
    %276 = tpu.matmul %273, %275, %cst_213 {dimension_numbers = #tpu.dot_dimension_numbers<[1], [0], [0], [1], [0, 0, 1, 1], [], []>} : vector<8x16xf32>, vector<16x16xf32>, vector<8x16xf32> -> vector<8x16xf32>
    %277 = arith.addf %272, %276 : vector<8x16xf32>
    %278 = vector.extract_strided_slice %266 {offsets = [16, 0], sizes = [8, 16], strides = [1, 1]} : vector<24x16xf32> to vector<8x16xf32>
    %c2_214 = arith.constant 2 : index
    %c0_215 = arith.constant 0 : index
    %c0_216 = arith.constant 0 : index
    %279 = vector.load %arg7[%c2_214, %c0_215, %c0_216] : memref<3x16x16xf32, #tpu.memory_space<vmem>>, vector<1x16x16xf32>
    %280 = vector.shape_cast %279 : vector<1x16x16xf32> to vector<16x16xf32>
    %cst_217 = arith.constant dense<0.000000e+00> : vector<8x16xf32>
    %281 = tpu.matmul %278, %280, %cst_217 {dimension_numbers = #tpu.dot_dimension_numbers<[1], [0], [0], [1], [0, 0, 1, 1], [], []>} : vector<8x16xf32>, vector<16x16xf32>, vector<8x16xf32> -> vector<8x16xf32>
    %282 = arith.addf %277, %281 : vector<8x16xf32>
    %283 = vector.broadcast %5 : vector<8x1xf32> to vector<8x16xf32>
    %284 = arith.addf %282, %283 : vector<8x16xf32>
    %285 = arith.addf %284, %265 : vector<8x16xf32>
    %cst_218 = arith.constant 0.000000e+00 : f32
    %286 = vector.broadcast %cst_218 : f32 to vector<8x16xf32>
    %287 = arith.maximumf %285, %286 : vector<8x16xf32>
    %288 = tpu.concatenate %57, %103, %149 in 0 : vector<8x16xf32>, vector<8x16xf32>, vector<8x16xf32> -> vector<24x16xf32>
    %cst_219 = arith.constant dense<0.000000e+00> : vector<4x16xf32>
    %289 = tpu.matmul %8, %288, %cst_219 {dimension_numbers = #tpu.dot_dimension_numbers<[1], [0], [0], [1], [0, 0, 1, 1], [], []>} : vector<4x24xf32>, vector<24x16xf32>, vector<4x16xf32> -> vector<4x16xf32>
    %290 = vector.broadcast %9 : vector<4x1xf32> to vector<4x16xf32>
    %291 = arith.addf %289, %290 : vector<4x16xf32>
    %cst_220 = arith.constant dense<0.000000e+00> : vector<4x16xf32>
    %292 = tpu.matmul %6, %149, %cst_220 {dimension_numbers = #tpu.dot_dimension_numbers<[1], [0], [0], [1], [0, 0, 1, 1], [], []>} : vector<4x8xf32>, vector<8x16xf32>, vector<4x16xf32> -> vector<4x16xf32>
    %293 = vector.broadcast %7 : vector<4x1xf32> to vector<4x16xf32>
    %294 = arith.addf %292, %293 : vector<4x16xf32>
    %295 = arith.addf %291, %294 : vector<4x16xf32>
    %cst_221 = arith.constant 0.000000e+00 : f32
    %296 = vector.broadcast %cst_221 : f32 to vector<4x16xf32>
    %297 = arith.maximumf %295, %296 : vector<4x16xf32>
    %298 = vector.shape_cast %297 : vector<4x16xf32> to vector<1x4x16xf32>
    %cst_222 = arith.constant dense<0.000000e+00> : vector<1xf32>
    %299 = vector.multi_reduction <add>, %298, %cst_222 [1, 2] : vector<1x4x16xf32> to vector<1xf32>
    %300 = vector.shape_cast %299 : vector<1xf32> to vector<1x1x1xf32>
    %301 = vector.extract %300[0, 0, 0] : f32 from vector<1x1x1xf32>
    %302 = vector.broadcast %301 : f32 to vector<1x1xf32>
    %cst_223 = arith.constant 6.400000e+01 : f32
    %303 = vector.broadcast %cst_223 : f32 to vector<1x1xf32>
    %304 = arith.divf %302, %303 : vector<1x1xf32>
    %305 = vector.broadcast %304 : vector<1x1xf32> to vector<4x16xf32>
    %306 = arith.subf %297, %305 : vector<4x16xf32>
    %307 = arith.mulf %306, %306 : vector<4x16xf32>
    %308 = vector.shape_cast %307 : vector<4x16xf32> to vector<1x4x16xf32>
    %cst_224 = arith.constant dense<0.000000e+00> : vector<1xf32>
    %309 = vector.multi_reduction <add>, %308, %cst_224 [1, 2] : vector<1x4x16xf32> to vector<1xf32>
    %310 = vector.shape_cast %309 : vector<1xf32> to vector<1x1x1xf32>
    %311 = vector.extract %310[0, 0, 0] : f32 from vector<1x1x1xf32>
    %312 = vector.broadcast %311 : f32 to vector<1x1xf32>
    %cst_225 = arith.constant 6.400000e+01 : f32
    %313 = vector.broadcast %cst_225 : f32 to vector<1x1xf32>
    %314 = arith.divf %312, %313 : vector<1x1xf32>
    %315 = vector.broadcast %304 : vector<1x1xf32> to vector<4x16xf32>
    %316 = arith.subf %297, %315 : vector<4x16xf32>
    %cst_226 = arith.constant 9.99999974E-6 : f32
    %317 = vector.broadcast %cst_226 : f32 to vector<1x1xf32>
    %318 = arith.addf %314, %317 : vector<1x1xf32>
    %319 = math.rsqrt %318 : vector<1x1xf32>
    %320 = vector.broadcast %319 : vector<1x1xf32> to vector<4x16xf32>
    %321 = arith.mulf %316, %320 : vector<4x16xf32>
    %322 = arith.mulf %321, %10 : vector<4x16xf32>
    %323 = arith.addf %322, %11 : vector<4x16xf32>
    %324 = tpu.concatenate %103, %149, %195 in 0 : vector<8x16xf32>, vector<8x16xf32>, vector<8x16xf32> -> vector<24x16xf32>
    %cst_227 = arith.constant dense<0.000000e+00> : vector<4x16xf32>
    %325 = tpu.matmul %8, %324, %cst_227 {dimension_numbers = #tpu.dot_dimension_numbers<[1], [0], [0], [1], [0, 0, 1, 1], [], []>} : vector<4x24xf32>, vector<24x16xf32>, vector<4x16xf32> -> vector<4x16xf32>
    %326 = vector.broadcast %9 : vector<4x1xf32> to vector<4x16xf32>
    %327 = arith.addf %325, %326 : vector<4x16xf32>
    %cst_228 = arith.constant dense<0.000000e+00> : vector<4x16xf32>
    %328 = tpu.matmul %6, %195, %cst_228 {dimension_numbers = #tpu.dot_dimension_numbers<[1], [0], [0], [1], [0, 0, 1, 1], [], []>} : vector<4x8xf32>, vector<8x16xf32>, vector<4x16xf32> -> vector<4x16xf32>
    %329 = vector.broadcast %7 : vector<4x1xf32> to vector<4x16xf32>
    %330 = arith.addf %328, %329 : vector<4x16xf32>
    %331 = arith.addf %327, %330 : vector<4x16xf32>
    %cst_229 = arith.constant 0.000000e+00 : f32
    %332 = vector.broadcast %cst_229 : f32 to vector<4x16xf32>
    %333 = arith.maximumf %331, %332 : vector<4x16xf32>
    %334 = vector.shape_cast %333 : vector<4x16xf32> to vector<1x4x16xf32>
    %cst_230 = arith.constant dense<0.000000e+00> : vector<1xf32>
    %335 = vector.multi_reduction <add>, %334, %cst_230 [1, 2] : vector<1x4x16xf32> to vector<1xf32>
    %336 = vector.shape_cast %335 : vector<1xf32> to vector<1x1x1xf32>
    %337 = vector.extract %336[0, 0, 0] : f32 from vector<1x1x1xf32>
    %338 = vector.broadcast %337 : f32 to vector<1x1xf32>
    %cst_231 = arith.constant 6.400000e+01 : f32
    %339 = vector.broadcast %cst_231 : f32 to vector<1x1xf32>
    %340 = arith.divf %338, %339 : vector<1x1xf32>
    %341 = vector.broadcast %340 : vector<1x1xf32> to vector<4x16xf32>
    %342 = arith.subf %333, %341 : vector<4x16xf32>
    %343 = arith.mulf %342, %342 : vector<4x16xf32>
    %344 = vector.shape_cast %343 : vector<4x16xf32> to vector<1x4x16xf32>
    %cst_232 = arith.constant dense<0.000000e+00> : vector<1xf32>
    %345 = vector.multi_reduction <add>, %344, %cst_232 [1, 2] : vector<1x4x16xf32> to vector<1xf32>
    %346 = vector.shape_cast %345 : vector<1xf32> to vector<1x1x1xf32>
    %347 = vector.extract %346[0, 0, 0] : f32 from vector<1x1x1xf32>
    %348 = vector.broadcast %347 : f32 to vector<1x1xf32>
    %cst_233 = arith.constant 6.400000e+01 : f32
    %349 = vector.broadcast %cst_233 : f32 to vector<1x1xf32>
    %350 = arith.divf %348, %349 : vector<1x1xf32>
    %351 = vector.broadcast %340 : vector<1x1xf32> to vector<4x16xf32>
    %352 = arith.subf %333, %351 : vector<4x16xf32>
    %cst_234 = arith.constant 9.99999974E-6 : f32
    %353 = vector.broadcast %cst_234 : f32 to vector<1x1xf32>
    %354 = arith.addf %350, %353 : vector<1x1xf32>
    %355 = math.rsqrt %354 : vector<1x1xf32>
    %356 = vector.broadcast %355 : vector<1x1xf32> to vector<4x16xf32>
    %357 = arith.mulf %352, %356 : vector<4x16xf32>
    %358 = arith.mulf %357, %10 : vector<4x16xf32>
    %359 = arith.addf %358, %11 : vector<4x16xf32>
    %360 = tpu.concatenate %149, %195, %241 in 0 : vector<8x16xf32>, vector<8x16xf32>, vector<8x16xf32> -> vector<24x16xf32>
    %cst_235 = arith.constant dense<0.000000e+00> : vector<4x16xf32>
    %361 = tpu.matmul %8, %360, %cst_235 {dimension_numbers = #tpu.dot_dimension_numbers<[1], [0], [0], [1], [0, 0, 1, 1], [], []>} : vector<4x24xf32>, vector<24x16xf32>, vector<4x16xf32> -> vector<4x16xf32>
    %362 = vector.broadcast %9 : vector<4x1xf32> to vector<4x16xf32>
    %363 = arith.addf %361, %362 : vector<4x16xf32>
    %cst_236 = arith.constant dense<0.000000e+00> : vector<4x16xf32>
    %364 = tpu.matmul %6, %241, %cst_236 {dimension_numbers = #tpu.dot_dimension_numbers<[1], [0], [0], [1], [0, 0, 1, 1], [], []>} : vector<4x8xf32>, vector<8x16xf32>, vector<4x16xf32> -> vector<4x16xf32>
    %365 = vector.broadcast %7 : vector<4x1xf32> to vector<4x16xf32>
    %366 = arith.addf %364, %365 : vector<4x16xf32>
    %367 = arith.addf %363, %366 : vector<4x16xf32>
    %cst_237 = arith.constant 0.000000e+00 : f32
    %368 = vector.broadcast %cst_237 : f32 to vector<4x16xf32>
    %369 = arith.maximumf %367, %368 : vector<4x16xf32>
    %370 = vector.shape_cast %369 : vector<4x16xf32> to vector<1x4x16xf32>
    %cst_238 = arith.constant dense<0.000000e+00> : vector<1xf32>
    %371 = vector.multi_reduction <add>, %370, %cst_238 [1, 2] : vector<1x4x16xf32> to vector<1xf32>
    %372 = vector.shape_cast %371 : vector<1xf32> to vector<1x1x1xf32>
    %373 = vector.extract %372[0, 0, 0] : f32 from vector<1x1x1xf32>
    %374 = vector.broadcast %373 : f32 to vector<1x1xf32>
    %cst_239 = arith.constant 6.400000e+01 : f32
    %375 = vector.broadcast %cst_239 : f32 to vector<1x1xf32>
    %376 = arith.divf %374, %375 : vector<1x1xf32>
    %377 = vector.broadcast %376 : vector<1x1xf32> to vector<4x16xf32>
    %378 = arith.subf %369, %377 : vector<4x16xf32>
    %379 = arith.mulf %378, %378 : vector<4x16xf32>
    %380 = vector.shape_cast %379 : vector<4x16xf32> to vector<1x4x16xf32>
    %cst_240 = arith.constant dense<0.000000e+00> : vector<1xf32>
    %381 = vector.multi_reduction <add>, %380, %cst_240 [1, 2] : vector<1x4x16xf32> to vector<1xf32>
    %382 = vector.shape_cast %381 : vector<1xf32> to vector<1x1x1xf32>
    %383 = vector.extract %382[0, 0, 0] : f32 from vector<1x1x1xf32>
    %384 = vector.broadcast %383 : f32 to vector<1x1xf32>
    %cst_241 = arith.constant 6.400000e+01 : f32
    %385 = vector.broadcast %cst_241 : f32 to vector<1x1xf32>
    %386 = arith.divf %384, %385 : vector<1x1xf32>
    %387 = vector.broadcast %376 : vector<1x1xf32> to vector<4x16xf32>
    %388 = arith.subf %369, %387 : vector<4x16xf32>
    %cst_242 = arith.constant 9.99999974E-6 : f32
    %389 = vector.broadcast %cst_242 : f32 to vector<1x1xf32>
    %390 = arith.addf %386, %389 : vector<1x1xf32>
    %391 = math.rsqrt %390 : vector<1x1xf32>
    %392 = vector.broadcast %391 : vector<1x1xf32> to vector<4x16xf32>
    %393 = arith.mulf %388, %392 : vector<4x16xf32>
    %394 = arith.mulf %393, %10 : vector<4x16xf32>
    %395 = arith.addf %394, %11 : vector<4x16xf32>
    %396 = tpu.concatenate %195, %241, %287 in 0 : vector<8x16xf32>, vector<8x16xf32>, vector<8x16xf32> -> vector<24x16xf32>
    %cst_243 = arith.constant dense<0.000000e+00> : vector<4x16xf32>
    %397 = tpu.matmul %8, %396, %cst_243 {dimension_numbers = #tpu.dot_dimension_numbers<[1], [0], [0], [1], [0, 0, 1, 1], [], []>} : vector<4x24xf32>, vector<24x16xf32>, vector<4x16xf32> -> vector<4x16xf32>
    %398 = vector.broadcast %9 : vector<4x1xf32> to vector<4x16xf32>
    %399 = arith.addf %397, %398 : vector<4x16xf32>
    %cst_244 = arith.constant dense<0.000000e+00> : vector<4x16xf32>
    %400 = tpu.matmul %6, %287, %cst_244 {dimension_numbers = #tpu.dot_dimension_numbers<[1], [0], [0], [1], [0, 0, 1, 1], [], []>} : vector<4x8xf32>, vector<8x16xf32>, vector<4x16xf32> -> vector<4x16xf32>
    %401 = vector.broadcast %7 : vector<4x1xf32> to vector<4x16xf32>
    %402 = arith.addf %400, %401 : vector<4x16xf32>
    %403 = arith.addf %399, %402 : vector<4x16xf32>
    %cst_245 = arith.constant 0.000000e+00 : f32
    %404 = vector.broadcast %cst_245 : f32 to vector<4x16xf32>
    %405 = arith.maximumf %403, %404 : vector<4x16xf32>
    %406 = vector.shape_cast %405 : vector<4x16xf32> to vector<1x4x16xf32>
    %cst_246 = arith.constant dense<0.000000e+00> : vector<1xf32>
    %407 = vector.multi_reduction <add>, %406, %cst_246 [1, 2] : vector<1x4x16xf32> to vector<1xf32>
    %408 = vector.shape_cast %407 : vector<1xf32> to vector<1x1x1xf32>
    %409 = vector.extract %408[0, 0, 0] : f32 from vector<1x1x1xf32>
    %410 = vector.broadcast %409 : f32 to vector<1x1xf32>
    %cst_247 = arith.constant 6.400000e+01 : f32
    %411 = vector.broadcast %cst_247 : f32 to vector<1x1xf32>
    %412 = arith.divf %410, %411 : vector<1x1xf32>
    %413 = vector.broadcast %412 : vector<1x1xf32> to vector<4x16xf32>
    %414 = arith.subf %405, %413 : vector<4x16xf32>
    %415 = arith.mulf %414, %414 : vector<4x16xf32>
    %416 = vector.shape_cast %415 : vector<4x16xf32> to vector<1x4x16xf32>
    %cst_248 = arith.constant dense<0.000000e+00> : vector<1xf32>
    %417 = vector.multi_reduction <add>, %416, %cst_248 [1, 2] : vector<1x4x16xf32> to vector<1xf32>
    %418 = vector.shape_cast %417 : vector<1xf32> to vector<1x1x1xf32>
    %419 = vector.extract %418[0, 0, 0] : f32 from vector<1x1x1xf32>
    %420 = vector.broadcast %419 : f32 to vector<1x1xf32>
    %cst_249 = arith.constant 6.400000e+01 : f32
    %421 = vector.broadcast %cst_249 : f32 to vector<1x1xf32>
    %422 = arith.divf %420, %421 : vector<1x1xf32>
    %423 = vector.broadcast %412 : vector<1x1xf32> to vector<4x16xf32>
    %424 = arith.subf %405, %423 : vector<4x16xf32>
    %cst_250 = arith.constant 9.99999974E-6 : f32
    %425 = vector.broadcast %cst_250 : f32 to vector<1x1xf32>
    %426 = arith.addf %422, %425 : vector<1x1xf32>
    %427 = math.rsqrt %426 : vector<1x1xf32>
    %428 = vector.broadcast %427 : vector<1x1xf32> to vector<4x16xf32>
    %429 = arith.mulf %424, %428 : vector<4x16xf32>
    %430 = arith.mulf %429, %10 : vector<4x16xf32>
    %431 = arith.addf %430, %11 : vector<4x16xf32>
    %432 = vector.shape_cast %323 : vector<4x16xf32> to vector<1x4x16xf32>
    %433 = vector.shape_cast %359 : vector<4x16xf32> to vector<1x4x16xf32>
    %434 = vector.shape_cast %395 : vector<4x16xf32> to vector<1x4x16xf32>
    %435 = vector.shape_cast %431 : vector<4x16xf32> to vector<1x4x16xf32>
    %436 = tpu.concatenate %432, %433, %434, %435 in 0 : vector<1x4x16xf32>, vector<1x4x16xf32>, vector<1x4x16xf32>, vector<1x4x16xf32> -> vector<4x4x16xf32>
    %437 = vector.shape_cast %436 : vector<4x4x16xf32> to vector<1x4x4x16xf32>
    %c0_251 = arith.constant 0 : index
    %c0_252 = arith.constant 0 : index
    %c0_253 = arith.constant 0 : index
    %c0_254 = arith.constant 0 : index
    %438 = vector.load %arg15[%c0_251, %c0_252, %c0_253, %c0_254] : memref<1x4x4x16xf32, #tpu.memory_space<vmem>>, vector<1x4x4x16xf32>
    tpu.vector_store %arg15[%c0_251, %c0_252, %c0_253, %c0_254], %437 {strides = array<i32>} : memref<1x4x4x16xf32, #tpu.memory_space<vmem>>, vector<1x4x4x16xf32>,
    return
  }
  func.func @transform_0(%arg0: i32) -> (i32, i32, i32, i32) {
    %c0_i32 = arith.constant 0 : i32
    %c0_i32_0 = arith.constant 0 : i32
    %c0_i32_1 = arith.constant 0 : i32
    %c0_i32_2 = arith.constant 0 : i32
    return %arg0, %c0_i32, %c0_i32_0, %c0_i32_1 : i32, i32, i32, i32
  }
  func.func @transform_1(%arg0: i32) -> (i32, i32) {
    %c0_i32 = arith.constant 0 : i32
    %c0_i32_0 = arith.constant 0 : i32
    %c0_i32_1 = arith.constant 0 : i32
    return %c0_i32, %c0_i32_0 : i32, i32
  }
  func.func @transform_2(%arg0: i32) -> (i32, i32) {
    %c0_i32 = arith.constant 0 : i32
    %c0_i32_0 = arith.constant 0 : i32
    %c0_i32_1 = arith.constant 0 : i32
    return %c0_i32, %c0_i32_0 : i32, i32
  }
  func.func @transform_3(%arg0: i32) -> (i32, i32) {
    %c0_i32 = arith.constant 0 : i32
    %c0_i32_0 = arith.constant 0 : i32
    %c0_i32_1 = arith.constant 0 : i32
    return %c0_i32, %c0_i32_0 : i32, i32
  }
  func.func @transform_4(%arg0: i32) -> (i32, i32) {
    %c0_i32 = arith.constant 0 : i32
    %c0_i32_0 = arith.constant 0 : i32
    %c0_i32_1 = arith.constant 0 : i32
    return %c0_i32, %c0_i32_0 : i32, i32
  }
  func.func @transform_5(%arg0: i32) -> (i32, i32) {
    %c0_i32 = arith.constant 0 : i32
    %c0_i32_0 = arith.constant 0 : i32
    %c0_i32_1 = arith.constant 0 : i32
    return %c0_i32, %c0_i32_0 : i32, i32
  }
  func.func @transform_6(%arg0: i32) -> (i32, i32, i32) {
    %c0_i32 = arith.constant 0 : i32
    %c0_i32_0 = arith.constant 0 : i32
    %c0_i32_1 = arith.constant 0 : i32
    %c0_i32_2 = arith.constant 0 : i32
    return %c0_i32, %c0_i32_0, %c0_i32_1 : i32, i32, i32
  }
  func.func @transform_7(%arg0: i32) -> (i32, i32) {
    %c0_i32 = arith.constant 0 : i32
    %c0_i32_0 = arith.constant 0 : i32
    %c0_i32_1 = arith.constant 0 : i32
    return %c0_i32, %c0_i32_0 : i32, i32
  }
  func.func @transform_8(%arg0: i32) -> (i32, i32) {
    %c0_i32 = arith.constant 0 : i32
    %c0_i32_0 = arith.constant 0 : i32
    %c0_i32_1 = arith.constant 0 : i32
    return %c0_i32, %c0_i32_0 : i32, i32
  }
  func.func @transform_9(%arg0: i32) -> (i32, i32) {
    %c0_i32 = arith.constant 0 : i32
    %c0_i32_0 = arith.constant 0 : i32
    %c0_i32_1 = arith.constant 0 : i32
    return %c0_i32, %c0_i32_0 : i32, i32
  }
  func.func @transform_10(%arg0: i32) -> (i32, i32) {
    %c0_i32 = arith.constant 0 : i32
    %c0_i32_0 = arith.constant 0 : i32
    %c0_i32_1 = arith.constant 0 : i32
    return %c0_i32, %c0_i32_0 : i32, i32
  }
  func.func @transform_11(%arg0: i32) -> (i32, i32) {
    %c0_i32 = arith.constant 0 : i32
    %c0_i32_0 = arith.constant 0 : i32
    %c0_i32_1 = arith.constant 0 : i32
    return %c0_i32, %c0_i32_0 : i32, i32
  }
  func.func @transform_12(%arg0: i32) -> (i32, i32) {
    %c0_i32 = arith.constant 0 : i32
    %c0_i32_0 = arith.constant 0 : i32
    %c0_i32_1 = arith.constant 0 : i32
    return %c0_i32, %c0_i32_0 : i32, i32
  }
  func.func @transform_13(%arg0: i32) -> (i32, i32) {
    %c0_i32 = arith.constant 0 : i32
    %c0_i32_0 = arith.constant 0 : i32
    %c0_i32_1 = arith.constant 0 : i32
    return %c0_i32, %c0_i32_0 : i32, i32
  }
  func.func @transform_14(%arg0: i32) -> (i32, i32, i32, i32) {
    %c0_i32 = arith.constant 0 : i32
    %c0_i32_0 = arith.constant 0 : i32
    %c0_i32_1 = arith.constant 0 : i32
    %c0_i32_2 = arith.constant 0 : i32
    return %arg0, %c0_i32, %c0_i32_0, %c0_i32_1 : i32, i32, i32, i32
  }
}

</mosaic_0001>

<bundles_post_ra>
// kernel: tpu_custom_call.1
= control target key start
LH: loop header
LB: loop body
LE: loop exit
PB: predicated region body
PF: predicated region fallthrough
CT: control target
= control target key end

     0   :  { %19 = vsyncpa [#allocation3], 0  ;;  %s5789_s0 = inlined_call_operand.vmem [shape: f32[2,8,4,16], index: 0, kind: input, shape index: {}]   ;;  %s5790_s1 = inlined_call_operand.vmem [shape: f32[8,4], index: 1, kind: input, shape index: {}]   ;;  %s5791_s2 = inlined_call_operand.vmem [shape: f32[8,1], index: 2, kind: input, shape index: {}]   ;;  %s5792_s3 = inlined_call_operand.vmem [shape: f32[16,12], index: 3, kind: input, shape index: {}]   ;;  %s5793_s4 = inlined_call_operand.vmem [shape: f32[16,1], index: 4, kind: input, shape index: {}]   ;;  %s5794_s5 = inlined_call_operand.vmem [shape: f32[24,8], index: 5, kind: input, shape index: {}]   ;;  %s5795_s6 = inlined_call_operand.hbm [shape: f32[3,16,16], index: 6, kind: input, shape index: {}]   ;;  %s5796_s7 = inlined_call_operand.vmem [shape: f32[8,1], index: 7, kind: input, shape index: {}]   ;;  %s5797_s8 = inlined_call_operand.vmem [shape: f32[4,8], index: 8, kind: input, shape index: {}]   ;;  %s5798_s9 = inlined_call_operand.vmem [shape: f32[4,1], index: 9, kind: input, shape index: {}]   ;;  %s5799_s10 = inlined_call_operand.vmem [shape: f32[4,24], index: 10, kind: input, shape index: {}]   ;;  %s5800_s11 = inlined_call_operand.vmem [shape: f32[4,1], index: 11, kind: input, shape index: {}]   ;;  %s5801_s12 = inlined_call_operand.vmem [shape: f32[4,16], index: 12, kind: input, shape index: {}]   ;;  %s5802_s13 = inlined_call_operand.vmem [shape: f32[4,16], index: 13, kind: input, shape index: {}]   ;;  %s5803_s14 = inlined_call_operand.hbm [shape: f32[2,4,4,16], index: 14, kind: output, shape index: {}]  }
   0x1   :  { %20 = vsyncpa [#allocation4], 0 }
   0x2   :  { %22 = vsyncpa [#allocation4 + $0x1], 0  ;;  %s5109_s29 = smov 0   ;;  %s5111_s30 = smov 0  }
   0x3   :  { %s5113_s15 = smov 0   ;;  %s5115_s16 = smov 0  }
   0x4 LB: > { %5811 = sst [smem:[#allocation8_spill]] %s5017_s15  ;;  %s5130_s17 = sadd.s32 4294967295, %s5021_s16   ;;  %s5021_s16 = sphi %s5115_s16, %s5827_s16   ;;  %s5017_s15 = sphi %s5113_s15, %s5832_s15   ;;  %s5013_s30 = sphi %s5111_s30, %s5831_s30   ;;  %s5009_s29 = sphi %s5109_s29, %s5830_s29  }
   0x5   : > { %s4139_s18 = sadd.s32 4294967294, %s5021_s16   ;;  %s5134_s19 = sadd.s32 1, %s5021_s16  }
   0x6   : > { %5812 = sst [smem:[#allocation9_spill]] %s5134_s19  ;;  %s334_s20 = sadd.s32 1, %s5017_s15 }
   0x7   : > { %s331_s21 = ssub.s32 %s5021_s16, %s5134_s19  ;;  %p344_p0 = scmp.ne.s32.totalorder %s5017_s15, %s5013_s30 }
   0x8   : > { %p332_p1 = scmp.eq.s32.totalorder %s331_s21, 0  ;;  %p345_p2 = scmp.eq.s32.totalorder %s5130_s17, 1 }
   0x9   : > { %p350_p3 = scmp.ne.s32.totalorder %s5013_s30, %s5009_s29  ;;  %p351_p4 = scmp.eq.s32.totalorder %s4139_s18, 1 }
   0xa   : > { %s5145_s22 = scalar_select %p332_p1, %s5017_s15, %s334_s20  }
   0xb   : > { %p5147_p5 = por %p345_p2, %p344_p0  ;;  %p5151_p6 = por %p351_p4, %p350_p3 }
   0xc   : > { %5813 = sst [smem:[#allocation10_spill]] %s5145_s22  ;;  %p4140_p7 = scmp.ge.s32.totalorder %s5021_s16, 1 }
   0xd   : > { %s5814_s23 = scalar_select %p5147_p5, 1, 0 }
   0xe   : > { %s5815_s24 = scalar_select %p5151_p6, 1, 0 }
   0xf   : > { %p358_p8 = scmp.lt.s32.totalorder %s5021_s16, 3  ;;  %p5808_p9 = scmp.eq.s32.totalorder %s5130_s17, 0 }
  0x10   : > { %5816 = sst [smem:[#allocation11_spill]] %s5815_s24  ;;  %s5023_s26 = smov [#allocation2]  }
  0x11   : > { %p5158_p10 = pnand %p4140_p7, %p358_p8  ;;  %s385_s27 = sshll.u32 %s5023_s26, 4  ;;  %s386_s27 = int_to_ptr.vmem [resolvable:$true] %s385_s27 }
  0x12   : > { %s4927_s21 = scalar_lea.hbm %s5795_s6, 768 }
  0x13   : > { %s5817_s25 = scalar_select %p5158_p10, 1, 0 }
  0x14   : > { %p4840_p11 = pneg %p5158_p10  ;;  %p4928_p13 = scmp.ne.s32.totalorder %s5795_s6, %s4927_s21 }
  0x15   : > { %p4934_p3 = scmp.lt.u32.totalorder %s4927_s21, %s5795_s6 }
  0x16   : > { %p5166_p12 = pnand %p5808_p9, %p4840_p11 }
  0x18   : > { %p4929_p0 = pneg %p5166_p12 }
  0x1a   : > { %p4930_p1 = pnand %p4929_p0, %p4928_p13 }
  0x1c   : > { %p4931_p2 = pneg %p4930_p1 }
  0x1e   : > { %p4936_p4 = pnand %p4934_p3, %p4931_p2 }
  0x20   : > { %4939 = shalt.err (!%p4936_p4)
}
  0x21   : > { %s4940_s24 = scalar_lea.vmem %s386_s27, 768  ;;  %p4948_p9 = scmp.lt.s32.totalorder %s386_s27, %s386_s27 }
  0x22   : > { %p4941_p7 = scmp.ne.s32.totalorder %s386_s27, %s4940_s24  ;;  %p4949_p6 = scmp.lt.s32.totalorder %s4940_s24, %s4940_s24 }
  0x24   : > { %p4943_p8 = pnand %p4941_p7, %p4929_p0  ;;  %p4950_p5 = por %p4949_p6, %p4948_p9 }
  0x26   : > { %p4944_p11 = pneg %p4943_p8 }
  0x28   : > { %p4951_p10 = pnand %p4950_p5, %p4944_p11 }
  0x2a   : > { %4954 = shalt.err (!%p4951_p10)
}
  0x2b   : > { %s5024_s15 = smov 128   ;;  %s5025_s22 = smov 8  }
  0x2c   : > { %4843 = dma.hbm_to_vmem [thread:$0]  (!%p5166_p12), %s5795_s6, 768, %s386_s27, [#allocation3], %s5024_s15, %s5024_s15, %s5025_s22  }
  0x2d   : > { %p5819_p13 = scmp.ne.s32.totalorder %s5817_s25, 0 }
  0x2e   : > { %p5820_p1 = scmp.eq.s32.totalorder (!%p5819_p13), %s5130_s17, 0 }
  0x2f   : > { %430 = sbr.rel (%p5819_p13) target bundleno = 3883 (0xf2b), region = 76 }
  0x36   : > { %5000 = dma.done.wait (%p5820_p1), [#allocation3], 768   ;;  %p5821_p0 = pmov %p5820_p1 }
  0x37   : > { %p476_p5 = scmp.lt.s32.totalorder %s5130_s17, 1  ;;  %v5026_v0 = vmov 0.0   ;;  %vm5027_vm0 = vmmov 0   ;;  %v5028_v1 = vmov 0   ;;  %vm505_vm1 = vcmask 1043456   ;;  %v5210_v6 = vld [vmem:[%s5792_s3] sm:$0xff] }
  0x38   : > { %5002 = vsyncadd (%p5821_p0), [#allocation3], 4294966528  ;;  %4387 = vmatprep.subr.mxu1 %v5026_v0  ;;  %4389 = vmatprep.mubr.msk.f32.mxu1 %vm5027_vm0, %v5026_v0  ;;  %vm517_vm2 = vcmask 97280   ;;  %vm607_vm3 = vcmask 31744   ;;  %v5217_v7 = vld [vmem:[%s5790_s1] sm:$0xff]  ;;  %v486_v8 = vld [vmem:[%s5793_s4 + $0x8] sm:$0xff] }
  0x39   : > { %s477_s19 = scalar_select %p476_p5, %s5130_s17, 1  ;;  %4894 = vset.pattern.permute.xlu1 %v5028_v1  ;;  %4893 = vset.pattern.permute.xlu0 %v5028_v1  ;;  %v482_v9 = vld [vmem:[%s5791_s2] sm:$0xff]  ;;  %vm5029_vm4 = vmmov 1   ;;  %v5252_v15 = vld [vmem:[%s5792_s3 + $0x8] sm:$0xff]  ;;  %vm689_vm6 = vcmask 64512   ;;  %v5308_v40 = vld [vmem:[%s5794_s5 + $0x10] sm:$0xff] }
  0x3a   : > { %4384 = vmatprep.mubr.msk.f32.mxu0 %vm517_vm2, %v5210_v6  ;;  %vm5231_vm5 = vmpackc.low %vm505_vm1, %vm5029_vm4  ;;  %514 = vperm.xlu0 %4893, %v486_v8   ;;  %v485_v13 = vld [vmem:[%s5793_s4] sm:$0xff]  ;;  %v5296_v39 = vld [vmem:[%s5794_s5 + $0x8] sm:$0xff]  ;;  %v5030_v44 = vmov 0.0|0.0   ;;  %vm784_vm7 = vcmask 130048   ;;  %vm3341_vm8 = vcmask 195584   ;;  %vm3495_vm9 = vcmask 125952  }
  0x3b   : > { %s4240_s24 = sshll.u32 %s477_s19, 5  ;;  %604 = vperm.xlu1 %4894, %v482_v9   ;;  %v490_v14 = vld [vmem:[%s5796_s7] sm:$0xff]  ;;  %v782_v41 = vld [vmem:[#allocation2 + $0x10] sm:$0xff]  ;;  %v783_v42 = vld [vmem:[#allocation2 + $0x18] sm:$0xff]  ;;  %s473_s21 = sand.u32 1, %s5013_s30  }
  0x3c   : > { %s5200_s28 = scalar_lea.vmem %s5789_s0, %s4240_s24  ;;  %v494_v16 = vld [vmem:[%s5800_s11] sm:$0xf]  ;;  %v5318_v43 = vpack.c.bf16 %v783_v42, %v782_v41  ;;  %v780_v46 = vld [vmem:[#allocation2 + $0x8] sm:$0xff]  ;;  %s4145_s22 = sshll.u32 %s473_s21, 4 }
  0x3d   : > { %v497_v2 = vld [vmem:[%s5200_s28] sm:$0xf]  ;;  %v4148_v3 = vld [vmem:[%s5200_s28 + $0x4] sm:$0xf]  ;;  %v5205_v4 = vld [vmem:[%s5200_s28 + $0x8] sm:$0xf] }
  0x3e   : > { %v503_v5 = vrot.slane %v4148_v3, 4  ;;  %4388 = vmatpush3.msk.msra.mxu1 %vm505_vm1, %v5205_v4  ;;  %509 = vperm.xlu0 %4893, %v485_v13   ;;  %v492_v17 = vld [vmem:[%s5798_s9] sm:$0xf]  ;;  %v1018_v32 = vrot.slane %v5205_v4, 4  ;;  %v5275_v33 = vld [vmem:[%s5200_s28 + $0xc] sm:$0xf] }
  0x3f   : > { %4390 = vmatmul.mubr.msk.f32.vlgmr.msra.gmra.mrb[0].mxu1 %vm607_vm3, %v5217_v7  ;;  %4392 = vmatprep.subr.mxu1 %v5026_v0  ;;  %v5284_v38 = vld [vmem:[%s5794_s5] sm:$0xff]  ;;  %v933_v51 = vld [vmem:[#allocation2 + $0x28] sm:$0xff]  ;;  %s5715_s20 = scalar_lea.vmem [#allocation5], %s4145_s22  ;;  %s4241_s15 = sshll.u32 %s5130_s17, 8 }
  0x40   : > { %v506_v10 = vsel %vm505_vm1, %v497_v2, %v503_v5  ;;  %4394 = vmatprep.mubr.msk.f32.mxu1 %vm5027_vm0, %v5026_v0  ;;  %1010 = vperm.xlu1 %4894, %v490_v14   ;;  %v1020_v34 = vsel %vm505_vm1, %v4148_v3, %v1018_v32  ;;  %v779_v45 = vld [vmem:[#allocation2] sm:$0xff]  ;;  %s4065_s22 = sshll.u32 %s5715_s20, 4  ;;  %p5824_p9 = scmp.ne.s32.totalorder %s5814_s23, 0  ;;  %s5741_s22 = int_to_ptr.vmem [resolvable:$true] %s4065_s22 }
  0x41   : > { %v4700_v12 = vpack.c.bf16 %v5205_v4, %v506_v10  ;;  %v4715_v36 = vpack.c.bf16 %v5275_v33, %v1020_v34  ;;  %v5323_v49 = vpack.c.bf16 %v780_v46, %v779_v45  ;;  %v932_v50 = vld [vmem:[#allocation2 + $0x20] sm:$0xff]  ;;  %s4955_s17 = scalar_lea.vmem %s5741_s22, 256 }
  0x42   : > { %3338 = vperm.xlu0 %4893, %v494_v16   ;;  %v5329_v54 = vpack.c.bf16 %v933_v51, %v932_v50  ;;  %p4956_p6 = scmp.ne.s32.totalorder %s5741_s22, %s4955_s17 }
  0x43   : > { %4702 = vmatprep.subr.msk.bf16.mxu0 %vm5231_vm5, %v4700_v12 }
  0x44   : > { %4705 = vmatpush3.bf16.msk.msra.mxu0 %vm5231_vm5, %v4700_v12  ;;  %3417 = vperm.xlu1 %4894, %v492_v17   ;;  %v1482_v12 = vrot.slane %v5275_v33, 4  ;;  %p4957_p10 = pnand %p4956_p6, %p5824_p9 }
  0x45   : > { %4706 = vmatprep.subr.bf16.mxu0 %v5030_v44 }
  0x46   : > { %p4958_p12 = pneg %p4957_p10 }
  0x47   : > { %4385 = vmatmul.mubr.msk.f32.vlgmr.msra.gmra.mrb[0].mxu0 %vm517_vm2, %v5252_v15 }
  0x48   : > { %4407 = vmatprep.mubr.msk.f32.mxu0 %vm5027_vm0, %v5026_v0  ;;  %4708 = vmatpush3.bf16.msra.mxu0 %v5318_v43 }
  0x49   : > { %4709 = vmatprep.subr.bf16.mxu0 %v5030_v44 }
  0xb9   : > { %v5264_v20 = vpop.permute.xlu0 %514 }
  0xba   : > { %v5266_v21 = vpop.permute.xlu1 %604 }
  0xbd   : > { %v5269_v24 = vpop.permute.xlu0 %509 }
 0x112   : > { %v677_v18 = vpop.f32.mrb[0].mxu1 }
 0x113   : > { %v4391_v19 = vpop.f32.mrb[1].mxu1  ;;  %v678_v23 = vadd.f32 %v677_v18, %v5266_v21  ;;  %v5356_v18 = vld [vmem:[%s5200_s28 + $0x10] sm:$0xf] }
 0x114   : > { %v1484_v19 = vsel %vm505_vm1, %v5205_v4, %v1482_v12 }
 0x11a   : > { %v4386_v22 = vpop.f32.mrb[0].mxu0 }
 0x11b   : > { %v599_v25 = vadd.f32 %v4386_v22, %v5264_v20  ;;  %v593_v26 = vpop.f32.mrb[1].mxu0 }
 0x11c   : > { %v594_v27 = vadd.f32 %v593_v26, %v5269_v24 }
 0x11d   : > { %v4155_v28 = vmul.f32 -1.442695, %v599_v25  ;;  %v4730_v25 = vpack.c.bf16 %v5356_v18, %v1484_v19 }
 0x11e   : > { %v681_v29 = vadd.f32 %v678_v23, %v594_v27 }
 0x11f   : > { %4895 = vpow2.f32 %v4155_v28 }
 0x129   : > { %v4896_v30 = vpop.eup %4895 }
 0x12a   : > { %v685_v31 = vadd.f32 1.0, %v4896_v30 }
 0x12c   : > { %4897 = vrcp.f32 %v685_v31 }
 0x136   : > { %v4898_v35 = vpop.eup %4897 }
 0x137   : > { %v5279_v37 = vmul.f32 %v4898_v35, %v681_v29 }
 0x139   : > { %4393 = vmatpush3.msra.mxu1 %v5279_v37 }
 0x13a   : > { %4395 = vmatmul.mubr.msk.f32.vlgmr.msra.gmra.mrb[2].mxu1 %vm689_vm6, %v5284_v38  ;;  %4717 = vmatprep.subr.msk.bf16.mxu1 %vm5231_vm5, %v4715_v36 }
 0x13b   : > { %4397 = vmatprep.mubr.msk.f32.mxu1 %vm5027_vm0, %v5026_v0  ;;  %4720 = vmatpush3.bf16.msk.msra.mxu1 %vm5231_vm5, %v4715_v36 }
 0x13c   : > { %4436 = vmatprep.subr.mxu1 %v5026_v0 }
 0x13e   : > { %4398 = vmatmul.mubr.msk.f32.gmra.mrb[4].mxu1 %vm689_vm6, %v5296_v39 }
 0x13f   : > { %4400 = vmatprep.mubr.msk.f32.mxu1 %vm5027_vm0, %v5026_v0 }
 0x142   : > { %4401 = vmatmul.mubr.msk.f32.gmra.mrb[6].mxu1 %vm689_vm6, %v5308_v40 }
 0x143   : > { %4428 = vmatprep.mubr.msk.f32.mxu1 %vm517_vm2, %v5210_v6 }
 0x146   : > { %4429 = vmatmul.mubr.msk.f32.vlgmr.msra.gmra.mrb[8].mxu1 %vm517_vm2, %v5252_v15 }
 0x147   : > { %4438 = vmatprep.mubr.msk.f32.mxu1 %vm5027_vm0, %v5026_v0 }
 0x20d   : > { %v765_v47 = vpop.f32.mrb[2].mxu1 }
 0x20e   : > { %v4396_v48 = vpop.f32.mrb[3].mxu1 }
 0x211   : > { %v770_v52 = vpop.f32.mrb[4].mxu1 }
 0x212   : > { %v4399_v53 = vpop.f32.mrb[5].mxu1  ;;  %4408 = vmatmul.mubr.msk.f32.vlgmr.msra.gmra.mrb[2].mxu0 %vm784_vm7, %v770_v52 }
 0x213   : > { %4711 = vmatpush3.bf16.msra.mxu0 %v5323_v49  ;;  %4414 = vmatprep.mubr.msk.f32.mxu0 %vm5027_vm0, %v5026_v0 }
 0x214   : > { %4712 = vmatprep.subr.bf16.mxu0 %v5030_v44 }
 0x215   : > { %v775_v55 = vpop.f32.mrb[6].mxu1 }
 0x216   : > { %4415 = vmatmul.mubr.msk.f32.vlgmr.msra.gmra.mrb[4].mxu0 %vm784_vm7, %v765_v47  ;;  %v4402_v56 = vpop.f32.mrb[7].mxu1 }
 0x217   : > { %4714 = vmatpush3.bf16.msra.mxu0 %v5329_v54  ;;  %4421 = vmatprep.mubr.msk.f32.mxu0 %vm5027_vm0, %v5026_v0 }
 0x218   : > { %4431 = vmatprep.subr.mxu0 %v5026_v0 }
 0x219   : > { %v4430_v57 = vpop.f32.mrb[8].mxu1 }
 0x21a   : > { %4422 = vmatmul.mubr.msk.f32.vlgmr.msra.gmra.mrb[6].mxu0 %vm784_vm7, %v775_v55  ;;  %v1090_v58 = vpop.f32.mrb[9].mxu1  ;;  %v1096_v59 = vadd.f32 %v4430_v57, %v5264_v20  ;;  %v1946_v55 = vrot.slane %v5356_v18, 4 }
 0x21b   : > { %4432 = vmatpush3.msk.msra.mxu0 %vm505_vm1, %v5275_v33  ;;  %4433 = vmatprep.mubr.msk.f32.mxu0 %vm5027_vm0, %v5026_v0  ;;  %v1091_v14 = vadd.f32 %v1090_v58, %v5269_v24 }
 0x21c   : > { %4721 = vmatprep.subr.bf16.mxu0 %v5030_v44  ;;  %v4168_v60 = vmul.f32 -1.442695, %v1096_v59 }
 0x21e   : > { %4434 = vmatmul.mubr.msk.f32.vlgmr.msra.gmra.mrb[8].mxu0 %vm607_vm3, %v5217_v7  ;;  %4899 = vpow2.f32 %v4168_v60  ;;  %v5414_v60 = vld [vmem:[%s5200_s28 + $0x14] sm:$0xf] }
 0x21f   : > { %4723 = vmatpush3.bf16.msra.mxu0 %v5318_v43  ;;  %4451 = vmatprep.mubr.msk.f32.mxu0 %vm5027_vm0, %v5026_v0 }
 0x220   : > { %4724 = vmatprep.subr.bf16.mxu0 %v5030_v44 }
 0x228   : > { %v4900_v61 = vpop.eup %4899 }
 0x229   : > { %v1173_v1 = vadd.f32 1.0, %v4900_v61  ;;  %v1948_v61 = vsel %vm505_vm1, %v5275_v33, %v1946_v55 }
 0x22b   : > { %4901 = vrcp.f32 %v1173_v1  ;;  %v4745_v1 = vpack.c.bf16 %v5414_v60, %v1948_v61 }
 0x235   : > { %v4902_v23 = vpop.eup %4901 }
 0x2e5   : > { %v854_v62 = vpop.f32.mrb[2].mxu0 }
 0x2e6   : > { %v4409_v63 = vpop.f32.mrb[3].mxu0 }
 0x2e9   : > { %v927_v2 = vpop.f32.mrb[4].mxu0 }
 0x2ea   : > { %v928_v3 = vadd.f32 %v927_v2, %v854_v62  ;;  %v4416_v5 = vpop.f32.mrb[5].mxu0 }
 0x2ed   : > { %v1003_v8 = vpop.f32.mrb[6].mxu0 }
 0x2ee   : > { %v5350_v9 = vadd.f32 %v1003_v8, %v928_v3  ;;  %v4423_v10 = vpop.f32.mrb[7].mxu0 }
 0x2f1   : > { %v1165_v13 = vpop.f32.mrb[8].mxu0 }
 0x2f2   : > { %v1166_v16 = vadd.f32 %v1165_v13, %v5266_v21  ;;  %v4435_v17 = vpop.f32.mrb[9].mxu0 }
 0x2f4   : > { %v1169_v22 = vadd.f32 %v1166_v16, %v1091_v14 }
 0x2f6   : > { %v5361_v26 = vmul.f32 %v4902_v23, %v1169_v22 }
 0x2f8   : > { %4437 = vmatpush3.msra.mxu1 %v5361_v26 }
 0x2f9   : > { %4439 = vmatmul.mubr.msk.f32.vlgmr.msra.gmra.mrb[10].mxu1 %vm689_vm6, %v5284_v38  ;;  %4732 = vmatprep.subr.msk.bf16.mxu1 %vm5231_vm5, %v4730_v25 }
 0x2fa   : > { %4441 = vmatprep.mubr.msk.f32.mxu1 %vm5027_vm0, %v5026_v0  ;;  %4735 = vmatpush3.bf16.msk.msra.mxu1 %vm5231_vm5, %v4730_v25 }
 0x2fb   : > { %4480 = vmatprep.subr.mxu1 %v5026_v0 }
 0x2fd   : > { %4442 = vmatmul.mubr.msk.f32.gmra.mrb[12].mxu1 %vm689_vm6, %v5296_v39 }
 0x2fe   : > { %4444 = vmatprep.mubr.msk.f32.mxu1 %vm5027_vm0, %v5026_v0 }
 0x301   : > { %4445 = vmatmul.mubr.msk.f32.gmra.mrb[14].mxu1 %vm689_vm6, %v5308_v40 }
 0x302   : > { %4472 = vmatprep.mubr.msk.f32.mxu1 %vm517_vm2, %v5210_v6 }
 0x305   : > { %4473 = vmatmul.mubr.msk.f32.vlgmr.msra.gmra.mrb[16].mxu1 %vm517_vm2, %v5252_v15 }
 0x306   : > { %4482 = vmatprep.mubr.msk.f32.mxu1 %vm5027_vm0, %v5026_v0 }
 0x3cc   : > { %v1243_v4 = vpop.f32.mrb[10].mxu1 }
 0x3cd   : > { %v4440_v27 = vpop.f32.mrb[11].mxu1 }
 0x3d0   : > { %v1248_v28 = vpop.f32.mrb[12].mxu1 }
 0x3d1   : > { %v4443_v29 = vpop.f32.mrb[13].mxu1  ;;  %4452 = vmatmul.mubr.msk.f32.vlgmr.msra.gmra.mrb[10].mxu0 %vm784_vm7, %v1248_v28 }
 0x3d2   : > { %4726 = vmatpush3.bf16.msra.mxu0 %v5323_v49  ;;  %4458 = vmatprep.mubr.msk.f32.mxu0 %vm5027_vm0, %v5026_v0 }
 0x3d3   : > { %4727 = vmatprep.subr.bf16.mxu0 %v5030_v44 }
 0x3d4   : > { %v1253_v30 = vpop.f32.mrb[14].mxu1 }
 0x3d5   : > { %4459 = vmatmul.mubr.msk.f32.vlgmr.msra.gmra.mrb[12].mxu0 %vm784_vm7, %v1243_v4  ;;  %v4446_v31 = vpop.f32.mrb[15].mxu1 }
 0x3d6   : > { %4729 = vmatpush3.bf16.msra.mxu0 %v5329_v54  ;;  %4465 = vmatprep.mubr.msk.f32.mxu0 %vm5027_vm0, %v5026_v0 }
 0x3d7   : > { %4475 = vmatprep.subr.mxu0 %v5026_v0 }
 0x3d8   : > { %v4474_v32 = vpop.f32.mrb[16].mxu1 }
 0x3d9   : > { %4466 = vmatmul.mubr.msk.f32.vlgmr.msra.gmra.mrb[14].mxu0 %vm784_vm7, %v1253_v30  ;;  %v1554_v34 = vpop.f32.mrb[17].mxu1  ;;  %v1560_v35 = vadd.f32 %v4474_v32, %v5264_v20  ;;  %v2410_v32 = vrot.slane %v5414_v60, 4 }
 0x3da   : > { %4476 = vmatpush3.msk.msra.mxu0 %vm505_vm1, %v5356_v18  ;;  %4477 = vmatprep.mubr.msk.f32.mxu0 %vm5027_vm0, %v5026_v0  ;;  %v1555_v57 = vadd.f32 %v1554_v34, %v5269_v24 }
 0x3db   : > { %4736 = vmatprep.subr.bf16.mxu0 %v5030_v44  ;;  %v4181_v36 = vmul.f32 -1.442695, %v1560_v35 }
 0x3dd   : > { %4478 = vmatmul.mubr.msk.f32.vlgmr.msra.gmra.mrb[16].mxu0 %vm607_vm3, %v5217_v7  ;;  %4903 = vpow2.f32 %v4181_v36 }
 0x3de   : > { %4738 = vmatpush3.bf16.msra.mxu0 %v5318_v43  ;;  %4495 = vmatprep.mubr.msk.f32.mxu0 %vm5027_vm0, %v5026_v0 }
 0x3df   : > { %4739 = vmatprep.subr.bf16.mxu0 %v5030_v44 }
 0x3e7   : > { %v4904_v41 = vpop.eup %4903 }
 0x3e8   : > { %v1637_v46 = vadd.f32 1.0, %v4904_v41 }
 0x3ea   : > { %4905 = vrcp.f32 %v1637_v46 }
 0x3f4   : > { %v4906_v63 = vpop.eup %4905 }
 0x4a4   : > { %v1326_v42 = vpop.f32.mrb[10].mxu0 }
 0x4a5   : > { %v4453_v45 = vpop.f32.mrb[11].mxu0 }
 0x4a6   : > { %v2412_v45 = vsel %vm505_vm1, %v5356_v18, %v2410_v32 }
 0x4a8   : > { %v1399_v47 = vpop.f32.mrb[12].mxu0 }
 0x4a9   : > { %v1400_v48 = vadd.f32 %v1399_v47, %v1326_v42  ;;  %v4460_v50 = vpop.f32.mrb[13].mxu0  ;;  %v5472_v42 = vld [vmem:[%s5200_s28 + $0x18] sm:$0xf] }
 0x4ac   : > { %v1472_v51 = vpop.f32.mrb[14].mxu0 }
 0x4ad   : > { %v5408_v52 = vadd.f32 %v1472_v51, %v1400_v48  ;;  %v4467_v53 = vpop.f32.mrb[15].mxu0  ;;  %v4760_v48 = vpack.c.bf16 %v5472_v42, %v2412_v45 }
 0x4b0   : > { %v1629_v56 = vpop.f32.mrb[16].mxu0 }
 0x4b1   : > { %v1630_v58 = vadd.f32 %v1629_v56, %v5266_v21  ;;  %v4479_v59 = vpop.f32.mrb[17].mxu0 }
 0x4b3   : > { %v1633_v62 = vadd.f32 %v1630_v58, %v1555_v57 }
 0x4b5   : > { %v5419_v2 = vmul.f32 %v4906_v63, %v1633_v62 }
 0x4b7   : > { %4481 = vmatpush3.msra.mxu1 %v5419_v2 }
 0x4b8   : > { %4483 = vmatmul.mubr.msk.f32.vlgmr.msra.gmra.mrb[18].mxu1 %vm689_vm6, %v5284_v38  ;;  %4747 = vmatprep.subr.msk.bf16.mxu1 %vm5231_vm5, %v4745_v1 }
 0x4b9   : > { %4485 = vmatprep.mubr.msk.f32.mxu1 %vm5027_vm0, %v5026_v0  ;;  %4750 = vmatpush3.bf16.msk.msra.mxu1 %vm5231_vm5, %v4745_v1 }
 0x4ba   : > { %4524 = vmatprep.subr.mxu1 %v5026_v0 }
 0x4bc   : > { %4486 = vmatmul.mubr.msk.f32.gmra.mrb[20].mxu1 %vm689_vm6, %v5296_v39 }
 0x4bd   : > { %4488 = vmatprep.mubr.msk.f32.mxu1 %vm5027_vm0, %v5026_v0 }
 0x4c0   : > { %4489 = vmatmul.mubr.msk.f32.gmra.mrb[22].mxu1 %vm689_vm6, %v5308_v40 }
 0x4c1   : > { %4516 = vmatprep.mubr.msk.f32.mxu1 %vm517_vm2, %v5210_v6 }
 0x4c4   : > { %4517 = vmatmul.mubr.msk.f32.vlgmr.msra.gmra.mrb[24].mxu1 %vm517_vm2, %v5252_v15 }
 0x4c5   : > { %4526 = vmatprep.mubr.msk.f32.mxu1 %vm5027_vm0, %v5026_v0 }
 0x58b   : > { %v1707_v33 = vpop.f32.mrb[18].mxu1 }
 0x58c   : > { %v4484_v3 = vpop.f32.mrb[19].mxu1 }
 0x58f   : > { %v1712_v5 = vpop.f32.mrb[20].mxu1 }
 0x590   : > { %v4487_v8 = vpop.f32.mrb[21].mxu1  ;;  %4496 = vmatmul.mubr.msk.f32.vlgmr.msra.gmra.mrb[18].mxu0 %vm784_vm7, %v1712_v5 }
 0x591   : > { %4741 = vmatpush3.bf16.msra.mxu0 %v5323_v49  ;;  %4502 = vmatprep.mubr.msk.f32.mxu0 %vm5027_vm0, %v5026_v0 }
 0x592   : > { %4742 = vmatprep.subr.bf16.mxu0 %v5030_v44 }
 0x593   : > { %v1717_v10 = vpop.f32.mrb[22].mxu1 }
 0x594   : > { %4503 = vmatmul.mubr.msk.f32.vlgmr.msra.gmra.mrb[20].mxu0 %vm784_vm7, %v1707_v33  ;;  %v4490_v12 = vpop.f32.mrb[23].mxu1 }
 0x595   : > { %4744 = vmatpush3.bf16.msra.mxu0 %v5329_v54  ;;  %4509 = vmatprep.mubr.msk.f32.mxu0 %vm5027_vm0, %v5026_v0 }
 0x596   : > { %4519 = vmatprep.subr.mxu0 %v5026_v0 }
 0x597   : > { %v4518_v13 = vpop.f32.mrb[24].mxu1 }
 0x598   : > { %4510 = vmatmul.mubr.msk.f32.vlgmr.msra.gmra.mrb[22].mxu0 %vm784_vm7, %v1717_v10  ;;  %v2018_v14 = vpop.f32.mrb[25].mxu1  ;;  %v2024_v16 = vadd.f32 %v4518_v13, %v5264_v20  ;;  %v2874_v13 = vrot.slane %v5472_v42, 4 }
 0x599   : > { %4520 = vmatpush3.msk.msra.mxu0 %vm505_vm1, %v5414_v60  ;;  %4521 = vmatprep.mubr.msk.f32.mxu0 %vm5027_vm0, %v5026_v0  ;;  %v2019_v35 = vadd.f32 %v2018_v14, %v5269_v24 }
 0x59a   : > { %4751 = vmatprep.subr.bf16.mxu0 %v5030_v44  ;;  %v4194_v17 = vmul.f32 -1.442695, %v2024_v16 }
 0x59c   : > { %4522 = vmatmul.mubr.msk.f32.vlgmr.msra.gmra.mrb[24].mxu0 %vm607_vm3, %v5217_v7  ;;  %4907 = vpow2.f32 %v4194_v17 }
 0x59d   : > { %4753 = vmatpush3.bf16.msra.mxu0 %v5318_v43  ;;  %4539 = vmatprep.mubr.msk.f32.mxu0 %vm5027_vm0, %v5026_v0 }
 0x59e   : > { %4754 = vmatprep.subr.bf16.mxu0 %v5030_v44 }
 0x5a6   : > { %v4908_v19 = vpop.eup %4907 }
 0x5a7   : > { %v2101_v25 = vadd.f32 1.0, %v4908_v19 }
 0x5a9   : > { %4909 = vrcp.f32 %v2101_v25  ;;  %v4214_v25 = vld [vmem:[%s5200_s28 + $0x1c] sm:$0xf] }
 0x5b3   : > { %v4910_v47 = vpop.eup %4909 }
 0x663   : > { %v1790_v22 = vpop.f32.mrb[18].mxu0 }
 0x664   : > { %v4497_v23 = vpop.f32.mrb[19].mxu0 }
 0x667   : > { %v1863_v4 = vpop.f32.mrb[20].mxu0 }
 0x668   : > { %v1864_v27 = vadd.f32 %v1863_v4, %v1790_v22  ;;  %v4504_v28 = vpop.f32.mrb[21].mxu0  ;;  %v2876_v4 = vsel %vm505_vm1, %v5414_v60, %v2874_v13 }
 0x66b   : > { %v1936_v29 = vpop.f32.mrb[22].mxu0 }
 0x66c   : > { %v5466_v30 = vadd.f32 %v1936_v29, %v1864_v27  ;;  %v4511_v31 = vpop.f32.mrb[23].mxu0  ;;  %v4775_v29 = vpack.c.bf16 %v4214_v25, %v2876_v4 }
 0x66f   : > { %v2093_v34 = vpop.f32.mrb[24].mxu0 }
 0x670   : > { %v2094_v36 = vadd.f32 %v2093_v34, %v5266_v21  ;;  %v4523_v41 = vpop.f32.mrb[25].mxu0 }
 0x672   : > { %v2097_v46 = vadd.f32 %v2094_v36, %v2019_v35 }
 0x674   : > { %v5477_v50 = vmul.f32 %v4910_v47, %v2097_v46 }
 0x676   : > { %4525 = vmatpush3.msra.mxu1 %v5477_v50 }
 0x677   : > { %4527 = vmatmul.mubr.msk.f32.vlgmr.msra.gmra.mrb[26].mxu1 %vm689_vm6, %v5284_v38  ;;  %4762 = vmatprep.subr.msk.bf16.mxu1 %vm5231_vm5, %v4760_v48 }
 0x678   : > { %4529 = vmatprep.mubr.msk.f32.mxu1 %vm5027_vm0, %v5026_v0  ;;  %4765 = vmatpush3.bf16.msk.msra.mxu1 %vm5231_vm5, %v4760_v48 }
 0x679   : > { %4568 = vmatprep.subr.mxu1 %v5026_v0 }
 0x67b   : > { %4530 = vmatmul.mubr.msk.f32.gmra.mrb[28].mxu1 %vm689_vm6, %v5296_v39 }
 0x67c   : > { %4532 = vmatprep.mubr.msk.f32.mxu1 %vm5027_vm0, %v5026_v0 }
 0x67f   : > { %4533 = vmatmul.mubr.msk.f32.gmra.mrb[30].mxu1 %vm689_vm6, %v5308_v40 }
 0x680   : > { %4560 = vmatprep.mubr.msk.f32.mxu1 %vm517_vm2, %v5210_v6 }
 0x683   : > { %4561 = vmatmul.mubr.msk.f32.vlgmr.msra.gmra.mrb[32].mxu1 %vm517_vm2, %v5252_v15 }
 0x684   : > { %4570 = vmatprep.mubr.msk.f32.mxu1 %vm5027_vm0, %v5026_v0 }
 0x74a   : > { %v2171_v18 = vpop.f32.mrb[26].mxu1 }
 0x74b   : > { %v4528_v51 = vpop.f32.mrb[27].mxu1 }
 0x74e   : > { %v2176_v53 = vpop.f32.mrb[28].mxu1 }
 0x74f   : > { %v4531_v55 = vpop.f32.mrb[29].mxu1  ;;  %4540 = vmatmul.mubr.msk.f32.vlgmr.msra.gmra.mrb[26].mxu0 %vm784_vm7, %v2176_v53 }
 0x750   : > { %4756 = vmatpush3.bf16.msra.mxu0 %v5323_v49  ;;  %4546 = vmatprep.mubr.msk.f32.mxu0 %vm5027_vm0, %v5026_v0  ;;  %v5578_v55 = vpop.permute.xlu1 %1010 }
 0x751   : > { %4757 = vmatprep.subr.bf16.mxu0 %v5030_v44 }
 0x752   : > { %v2181_v56 = vpop.f32.mrb[30].mxu1 }
 0x753   : > { %4547 = vmatmul.mubr.msk.f32.vlgmr.msra.gmra.mrb[28].mxu0 %vm784_vm7, %v2171_v18  ;;  %v4534_v57 = vpop.f32.mrb[31].mxu1 }
 0x754   : > { %4759 = vmatpush3.bf16.msra.mxu0 %v5329_v54  ;;  %4553 = vmatprep.mubr.msk.f32.mxu0 %vm5027_vm0, %v5026_v0 }
 0x755   : > { %4563 = vmatprep.subr.mxu0 %v5026_v0 }
 0x756   : > { %v4562_v58 = vpop.f32.mrb[32].mxu1 }
 0x757   : > { %4554 = vmatmul.mubr.msk.f32.vlgmr.msra.gmra.mrb[30].mxu0 %vm784_vm7, %v2181_v56  ;;  %v2482_v59 = vpop.f32.mrb[33].mxu1  ;;  %v2488_v61 = vadd.f32 %v4562_v58, %v5264_v20  ;;  %v1013_v56 = vadd.f32 %v5578_v55, %v5350_v9 }
 0x758   : > { %4564 = vmatpush3.msk.msra.mxu0 %vm505_vm1, %v5472_v42  ;;  %4565 = vmatprep.mubr.msk.f32.mxu0 %vm5027_vm0, %v5026_v0  ;;  %v2483_v19 = vadd.f32 %v2482_v59, %v5269_v24 }
 0x759   : > { %4766 = vmatprep.subr.bf16.mxu0 %v5030_v44  ;;  %v4207_v62 = vmul.f32 -1.442695, %v2488_v61  ;;  %v1014_v61 = vadd.f32 %v1013_v56, %v5279_v37  ;;  %v5617_v37 = vld [vmem:[%s5799_s10] sm:$0xf] }
 0x75b   : > { %4566 = vmatmul.mubr.msk.f32.vlgmr.msra.gmra.mrb[32].mxu0 %vm607_vm3, %v5217_v7  ;;  %4911 = vpow2.f32 %v4207_v62 }
 0x75c   : > { %4768 = vmatpush3.bf16.msra.mxu0 %v5318_v43  ;;  %4583 = vmatprep.mubr.msk.f32.mxu0 %vm5027_vm0, %v5026_v0 }
 0x75d   : > { %4769 = vmatprep.subr.bf16.mxu0 %v5030_v44 }
 0x765   : > { %v4912_v63 = vpop.eup %4911 }
 0x766   : > { %v2565_v3 = vadd.f32 1.0, %v4912_v63 }
 0x768   : > { %4913 = vrcp.f32 %v2565_v3 }
 0x772   : > { %v4914_v28 = vpop.eup %4913 }
 0x822   : > { %v2254_v1 = vpop.f32.mrb[26].mxu0 }
 0x823   : > { %v4541_v33 = vpop.f32.mrb[27].mxu0 }
 0x826   : > { %v2327_v5 = vpop.f32.mrb[28].mxu0 }
 0x827   : > { %v2328_v8 = vadd.f32 %v2327_v5, %v2254_v1  ;;  %v4548_v10 = vpop.f32.mrb[29].mxu0  ;;  %v1015_v5 = vmax.f32 %v1014_v61, 0.0 }
 0x82a   : > { %v2400_v12 = vpop.f32.mrb[30].mxu0 }
 0x82b   : > { %v5525_v14 = vadd.f32 %v2400_v12, %v2328_v8  ;;  %v4555_v16 = vpop.f32.mrb[31].mxu0 }
 0x82e   : > { %v2557_v17 = vpop.f32.mrb[32].mxu0 }
 0x82f   : > { %v2558_v22 = vadd.f32 %v2557_v17, %v5266_v21  ;;  %v4567_v23 = vpop.f32.mrb[33].mxu0 }
 0x831   : > { %v2561_v27 = vadd.f32 %v2558_v22, %v2483_v19 }
 0x833   : > { %v5532_v31 = vmul.f32 %v4914_v28, %v2561_v27 }
 0x835   : > { %4569 = vmatpush3.msra.mxu1 %v5532_v31 }
 0x836   : > { %4571 = vmatmul.mubr.msk.f32.vlgmr.msra.gmra.mrb[34].mxu1 %vm689_vm6, %v5284_v38  ;;  %4777 = vmatprep.subr.msk.bf16.mxu1 %vm5231_vm5, %v4775_v29 }
 0x837   : > { %4573 = vmatprep.mubr.msk.f32.mxu1 %vm5027_vm0, %v5026_v0  ;;  %4780 = vmatpush3.bf16.msk.msra.mxu1 %vm5231_vm5, %v4775_v29 }
 0x838   : > { %4612 = vmatprep.subr.mxu1 %v5026_v0 }
 0x83a   : > { %4574 = vmatmul.mubr.msk.f32.gmra.mrb[36].mxu1 %vm689_vm6, %v5296_v39 }
 0x83b   : > { %4576 = vmatprep.mubr.msk.f32.mxu1 %vm5027_vm0, %v5026_v0 }
 0x83e   : > { %4577 = vmatmul.mubr.msk.f32.gmra.mrb[38].mxu1 %vm689_vm6, %v5308_v40 }
 0x83f   : > { %4604 = vmatprep.mubr.msk.f32.mxu1 %vm517_vm2, %v5210_v6 }
 0x842   : > { %4605 = vmatmul.mubr.msk.f32.vlgmr.msra.gmra.mrb[40].mxu1 %vm517_vm2, %v5252_v15 }
 0x843   : > { %4614 = vmatprep.mubr.msk.f32.mxu1 %vm5027_vm0, %v5026_v0 }
 0x909   : > { %v2635_v11 = vpop.f32.mrb[34].mxu1 }
 0x90a   : > { %v4572_v60 = vpop.f32.mrb[35].mxu1 }
 0x90d   : > { %v2640_v32 = vpop.f32.mrb[36].mxu1 }
 0x90e   : > { %v4575_v34 = vpop.f32.mrb[37].mxu1  ;;  %4584 = vmatmul.mubr.msk.f32.vlgmr.msra.gmra.mrb[34].mxu0 %vm784_vm7, %v2640_v32 }
 0x90f   : > { %4771 = vmatpush3.bf16.msra.mxu0 %v5323_v49  ;;  %4590 = vmatprep.mubr.msk.f32.mxu0 %vm5027_vm0, %v5026_v0 }
 0x910   : > { %4772 = vmatprep.subr.bf16.mxu0 %v5030_v44 }
 0x911   : > { %v2645_v6 = vpop.f32.mrb[38].mxu1 }
 0x912   : > { %4591 = vmatmul.mubr.msk.f32.vlgmr.msra.gmra.mrb[36].mxu0 %vm784_vm7, %v2635_v11  ;;  %v4578_v15 = vpop.f32.mrb[39].mxu1 }
 0x913   : > { %4774 = vmatpush3.bf16.msra.mxu0 %v5329_v54  ;;  %4597 = vmatprep.mubr.msk.f32.mxu0 %vm5027_vm0, %v5026_v0 }
 0x914   : > { %4607 = vmatprep.subr.mxu0 %v5026_v0 }
 0x915   : > { %v4606_v35 = vpop.f32.mrb[40].mxu1 }
 0x916   : > { %4598 = vmatmul.mubr.msk.f32.vlgmr.msra.gmra.mrb[38].mxu0 %vm784_vm7, %v2645_v6  ;;  %v2946_v36 = vpop.f32.mrb[41].mxu1  ;;  %v2952_v41 = vadd.f32 %v4606_v35, %v5264_v20 }
 0x917   : > { %4608 = vmatpush3.msk.msra.mxu0 %vm505_vm1, %v4214_v25  ;;  %4609 = vmatprep.mubr.msk.f32.mxu0 %vm5027_vm0, %v5026_v0  ;;  %v2947_v62 = vadd.f32 %v2946_v36, %v5269_v24  ;;  %v2405_v24 = vadd.f32 %v5525_v14, %v5578_v55  ;;  %v3418_v25 = vpop.permute.xlu1 %3417 }
 0x918   : > { %4781 = vmatprep.subr.bf16.mxu0 %v5030_v44  ;;  %v4220_v42 = vmul.f32 -1.442695, %v2952_v41 }
 0x91a   : > { %4610 = vmatmul.mubr.msk.f32.vlgmr.msra.gmra.mrb[40].mxu0 %vm607_vm3, %v5217_v7  ;;  %4915 = vpow2.f32 %v4220_v42  ;;  %v1477_v7 = vadd.f32 %v5408_v52, %v5578_v55  ;;  %v1941_v52 = vadd.f32 %v5466_v30, %v5578_v55 }
 0x91b   : > { %4783 = vmatpush3.bf16.msra.mxu0 %v5318_v43  ;;  %4627 = vmatprep.mubr.msk.f32.mxu0 %vm5027_vm0, %v5026_v0 }
 0x91c   : > { %4784 = vmatprep.subr.bf16.mxu0 %v5030_v44  ;;  %v5585_v58 = vadd.f32 %v1477_v7, %v5361_v26  ;;  %v1942_v10 = vadd.f32 %v1941_v52, %v5419_v2  ;;  %v5629_v2 = vld [vmem:[%s5797_s8] sm:$0xf] }
 0x91e   : > { %v1479_v33 = vmax.f32 %v5585_v58, 0.0 }
 0x920   : > { %v4791_v26 = vpack.c.bf16 %v1479_v33, %v1015_v5 }
 0x924   : > { %v4916_v45 = vpop.eup %4915 }
 0x925   : > { %v3029_v48 = vadd.f32 1.0, %v4916_v45 }
 0x927   : > { %4917 = vrcp.f32 %v3029_v48 }
 0x931   : > { %v4918_v9 = vpop.eup %4917 }
 0x9e1   : > { %v2718_v46 = vpop.f32.mrb[34].mxu0 }
 0x9e2   : > { %v4585_v47 = vpop.f32.mrb[35].mxu0 }
 0x9e5   : > { %v2791_v18 = vpop.f32.mrb[36].mxu0 }
 0x9e6   : > { %v2792_v51 = vadd.f32 %v2791_v18, %v2718_v46  ;;  %v4592_v53 = vpop.f32.mrb[37].mxu0 }
 0x9e9   : > { %v2864_v43 = vpop.f32.mrb[38].mxu0 }
 0x9ea   : > { %v2868_v20 = vadd.f32 %v2864_v43, %v2792_v51  ;;  %v4599_v57 = vpop.f32.mrb[39].mxu0 }
 0x9ed   : > { %v3021_v59 = vpop.f32.mrb[40].mxu0 }
 0x9ee   : > { %v3022_v63 = vadd.f32 %v3021_v59, %v5266_v21  ;;  %v4611_v1 = vpop.f32.mrb[41].mxu0  ;;  %v1943_v21 = vmax.f32 %v1942_v10, 0.0 }
 0x9f0   : > { %v3025_v3 = vadd.f32 %v3022_v63, %v2947_v62  ;;  %v4794_v23 = vpack.c.bf16 %v1943_v21, %v1479_v33 }
 0x9f2   : > { %v5593_v8 = vmul.f32 %v4918_v9, %v3025_v3 }
 0x9f4   : > { %4613 = vmatpush3.msra.mxu1 %v5593_v8 }
 0x9f5   : > { %4615 = vmatmul.mubr.msk.f32.vlgmr.msra.gmra.mrb[42].mxu1 %vm689_vm6, %v5284_v38  ;;  %4790 = vmatprep.subr.bf16.mxu1 %v5030_v44  ;;  %v2406_v38 = vadd.f32 %v2405_v24, %v5477_v50 }
 0x9f6   : > { %4792 = vmatpush3.bf16.msra.mxu1 %v4791_v26  ;;  %4617 = vmatprep.mubr.msk.f32.mxu1 %vm5027_vm0, %v5026_v0 }
 0x9f7   : > { %4648 = vmatprep.subr.mxu1 %v5026_v0 }
 0x9f9   : > { %4618 = vmatmul.mubr.msk.f32.gmra.mrb[44].mxu1 %vm689_vm6, %v5296_v39  ;;  %v2407_v39 = vmax.f32 %v2406_v38, 0.0 }
 0x9fa   : > { %4649 = vmatpush3.msra.mxu1 %v1943_v21  ;;  %4620 = vmatprep.mubr.msk.f32.mxu1 %vm5027_vm0, %v5026_v0 }
 0x9fb   : > { %4653 = vmatprep.subr.mxu1 %v5026_v0  ;;  %v4797_v50 = vpack.c.bf16 %v2407_v39, %v1943_v21 }
 0x9fd   : > { %4621 = vmatmul.mubr.msk.f32.gmra.mrb[46].mxu1 %vm689_vm6, %v5308_v40  ;;  %v2869_v40 = vadd.f32 %v2868_v20, %v5578_v55 }
 0x9fe   : > { %4650 = vmatprep.mubr.msk.f32.mxu1 %vm5027_vm0, %v5026_v0 }
 0x9ff   : > { %v2870_v30 = vadd.f32 %v2869_v40, %v5532_v31 }
 0xa01   : > { %4651 = vmatmul.mubr.msk.f32.vlgmr.msra.gmra.mrb[48].mxu1 %vm3341_vm8, %v5617_v37  ;;  %v2871_v12 = vmax.f32 %v2870_v30, 0.0 }
 0xa02   : > { %4654 = vmatpush3.msra.mxu1 %v1943_v21  ;;  %4655 = vmatprep.mubr.msk.f32.mxu1 %vm5027_vm0, %v5026_v0 }
 0xa03   : > { %4796 = vmatprep.subr.bf16.mxu1 %v5030_v44  ;;  %v4800_v11 = vpack.c.bf16 %v2871_v12, %v2407_v39 }
 0xa09   : > { %4656 = vmatmul.mubr.msk.f32.vlgmr.msra.gmra.mrb[48].mxu1 %vm689_vm6, %v5629_v2 }
 0xa0a   : > { %4798 = vmatpush3.bf16.msra.mxu1 %v4797_v50  ;;  %4678 = vmatprep.mubr.msk.f32.mxu1 %vm5027_vm0, %v5026_v0 }
 0xa0b   : > { %4676 = vmatprep.subr.mxu1 %v5026_v0 }
 0xa0e   : > { %4677 = vmatpush3.msra.mxu1 %v2871_v12 }
 0xa0f   : > { %4679 = vmatmul.mubr.msk.f32.vlgmr.msra.gmra.mrb[50].mxu1 %vm3341_vm8, %v5617_v37  ;;  %4681 = vmatprep.subr.mxu1 %v5026_v0 }
 0xa10   : > { %4682 = vmatpush3.msra.mxu1 %v2871_v12  ;;  %4683 = vmatprep.mubr.msk.f32.mxu1 %vm5027_vm0, %v5026_v0 }
 0xa17   : > { %4684 = vmatmul.mubr.msk.f32.vlgmr.msra.gmra.mrb[50].mxu1 %vm689_vm6, %v5629_v2 }
 0xac8   : > { %v3099_v13 = vpop.f32.mrb[42].mxu1 }
 0xac9   : > { %v4616_v14 = vpop.f32.mrb[43].mxu1 }
 0xacc   : > { %v3104_v16 = vpop.f32.mrb[44].mxu1 }
 0xacd   : > { %4628 = vmatmul.mubr.msk.f32.vlgmr.msra.gmra.mrb[42].mxu0 %vm784_vm7, %v3104_v16  ;;  %v4619_v17 = vpop.f32.mrb[45].mxu1 }
 0xace   : > { %4786 = vmatpush3.bf16.msra.mxu0 %v5323_v49  ;;  %4634 = vmatprep.mubr.msk.f32.mxu0 %vm5027_vm0, %v5026_v0  ;;  %v3339_v49 = vpop.permute.xlu0 %3338 }
 0xacf   : > { %4787 = vmatprep.subr.bf16.mxu0 %v5030_v44  ;;  %v5658_v4 = vadd.f32 %v3418_v25, %v3339_v49 }
 0xad0   : > { %v3109_v19 = vpop.f32.mrb[46].mxu1 }
 0xad1   : > { %4635 = vmatmul.mubr.msk.f32.vlgmr.msra.gmra.mrb[44].mxu0 %vm784_vm7, %v3099_v13  ;;  %v4622_v22 = vpop.f32.mrb[47].mxu1 }
 0xad2   : > { %4789 = vmatpush3.bf16.msra.mxu0 %v5329_v54  ;;  %4641 = vmatprep.mubr.msk.f32.mxu0 %vm5027_vm0, %v5026_v0 }
 0xad3   : > { %4793 = vmatprep.subr.bf16.mxu0 %v5030_v44 }
 0xad5   : > { %4642 = vmatmul.mubr.msk.f32.vlgmr.msra.gmra.mrb[46].mxu0 %vm784_vm7, %v3109_v19 }
 0xad6   : > { %4795 = vmatpush3.bf16.msra.mxu0 %v4794_v23  ;;  %4664 = vmatprep.mubr.msk.f32.mxu0 %vm5027_vm0, %v5026_v0 }
 0xad7   : > { %4662 = vmatprep.subr.mxu0 %v5026_v0 }
 0xada   : > { %4663 = vmatpush3.msra.mxu0 %v2407_v39 }
 0xadb   : > { %4665 = vmatmul.mubr.msk.f32.vlgmr.msra.gmra.mrb[48].mxu0 %vm3341_vm8, %v5617_v37  ;;  %4667 = vmatprep.subr.mxu0 %v5026_v0 }
 0xadc   : > { %4668 = vmatpush3.msra.mxu0 %v2407_v39  ;;  %v3489_v54 = vpop.f32.mrb[48].mxu1  ;;  %4669 = vmatprep.mubr.msk.f32.mxu0 %vm5027_vm0, %v5026_v0 }
 0xadd   : > { %v4803_v27 = vadd.f32 %v5658_v4, %v3489_v54  ;;  %v4657_v28 = vpop.f32.mrb[49].mxu1  ;;  %4799 = vmatprep.subr.bf16.mxu0 %v5030_v44 }
 0xadf   : > { %v3494_v29 = vmax.f32 %v4803_v27, 0.0 }
 0xae1   : > { %v3496_v31 = vsel %vm3495_vm9, %v3494_v29, 0.0 }
 0xae2   : > { %3497 = vadd.xlane.f32.xlu0 %v3496_v31 }
 0xae3   : > { %4670 = vmatmul.mubr.msk.f32.vlgmr.msra.gmra.mrb[48].mxu0 %vm689_vm6, %v5629_v2 }
 0xae4   : > { %4801 = vmatpush3.bf16.msra.mxu0 %v4800_v11  ;;  %4692 = vmatprep.mubr.msk.f32.mxu0 %vm5027_vm0, %v5026_v0 }
 0xae5   : > { %4690 = vmatprep.subr.mxu0 %v5026_v0 }
 0xaea   : > { %v3837_v60 = vpop.f32.mrb[50].mxu1 }
 0xaeb   : > { %v4685_v32 = vpop.f32.mrb[51].mxu1  ;;  %v5676_v58 = vadd.f32 %v5658_v4, %v3837_v60 }
 0xb6f   : > { %v3498_v34 = vpop.xlane.xlu0 %3497 }
 0xb70   : > { %v3499_v6 = vrot.slane %v3498_v34, 4 }
 0xb72   : > { %v3500_v44 = vadd.f32 %v3499_v6, %v3498_v34 }
 0xb74   : > { %v3501_v15 = vrot.slane %v3500_v44, 2 }
 0xb76   : > { %v3502_v35 = vadd.f32 %v3501_v15, %v3500_v44 }
 0xb78   : > { %v3503_v36 = vrot.slane %v3502_v35, 1 }
 0xb7a   : > { %v3504_v41 = vadd.f32 %v3503_v36, %v3502_v35 }
 0xb7c   : > { %4818 = vpush %v3504_v41 }
 0xba0   : > { %v3182_v42 = vpop.f32.mrb[42].mxu0 }
 0xba1   : > { %v4629_v45 = vpop.f32.mrb[43].mxu0 }
 0xba4   : > { %v3255_v46 = vpop.f32.mrb[44].mxu0 }
 0xba5   : > { %v3256_v47 = vadd.f32 %v3255_v46, %v3182_v42  ;;  %v4636_v48 = vpop.f32.mrb[45].mxu0 }
 0xba8   : > { %v3328_v18 = vpop.f32.mrb[46].mxu0 }
 0xba9   : > { %v3332_v51 = vadd.f32 %v3328_v18, %v3256_v47  ;;  %v4643_v53 = vpop.f32.mrb[47].mxu0 }
 0xbab   : > { %v3333_v7 = vadd.f32 %v3332_v51, %v5578_v55  ;;  %v3842_v55 = vmax.f32 %v5676_v58, 0.0 }
 0xbad   : > { %v3334_v43 = vadd.f32 %v3333_v7, %v5593_v8  ;;  %s4819_s24 = spop %4818  ;;  %v3843_v3 = vsel %vm3495_vm9, %v3842_v55, 0.0 }
 0xbae   : > { %v3506_v56 = vstv %s4819_s24 }
 0xbaf   : > { %v3335_v20 = vmax.f32 %v3334_v43, 0.0  ;;  %v3508_v57 = vmul.f32 0.015625, %v3506_v56 }
 0xbb1   : > { %v3509_v59 = vsub.f32 %v3494_v29, %v3508_v57  ;;  %4691 = vmatpush3.msra.mxu0 %v3335_v20  ;;  %v5701_v29 = vld [vmem:[%s5801_s12] sm:$0xf] }
 0xbb2   : > { %4693 = vmatmul.mubr.msk.f32.vlgmr.msra.gmra.mrb[50].mxu0 %vm3341_vm8, %v5617_v37  ;;  %4695 = vmatprep.subr.mxu0 %v5026_v0 }
 0xbb3   : > { %4696 = vmatpush3.msra.mxu0 %v3335_v20  ;;  %v3510_v61 = vmul.f32 %v3509_v59, %v3509_v59  ;;  %4697 = vmatprep.mubr.msk.f32.mxu0 %vm5027_vm0, %v5026_v0 }
 0xbb5   : > { %v3511_v62 = vsel %vm3495_vm9, %v3510_v61, 0.0 }
 0xbb6   : > { %v3664_v63 = vpop.f32.mrb[48].mxu0  ;;  %3512 = vadd.xlane.f32.xlu1 %v3511_v62 }
 0xbb7   : > { %v4805_v1 = vadd.f32 %v5658_v4, %v3664_v63  ;;  %v4671_v33 = vpop.f32.mrb[49].mxu0 }
 0xbb9   : > { %v3669_v52 = vmax.f32 %v4805_v1, 0.0 }
 0xbba   : > { %4698 = vmatmul.mubr.msk.f32.vlgmr.msra.gmra.mrb[50].mxu0 %vm689_vm6, %v5629_v2  ;;  %3844 = vadd.xlane.f32.xlu1 %v3843_v3 }
 0xbbb   : > { %v3670_v0 = vsel %vm3495_vm9, %v3669_v52, 0.0 }
 0xbbc   : > { %3671 = vadd.xlane.f32.xlu0 %v3670_v0 }
 0xc43   : > { %v3513_v9 = vpop.xlane.xlu1 %3512 }
 0xc44   : > { %v3514_v5 = vrot.slane %v3513_v9, 4 }
 0xc46   : > { %v3515_v8 = vadd.f32 %v3514_v5, %v3513_v9 }
 0xc47   : > { %v3845_v34 = vpop.xlane.xlu1 %3844 }
 0xc48   : > { %v3516_v26 = vrot.slane %v3515_v8, 2  ;;  %v3846_v6 = vrot.slane %v3845_v34, 4 }
 0xc49   : > { %v3672_v10 = vpop.xlane.xlu0 %3671 }
 0xc4a   : > { %v3673_v21 = vrot.slane %v3672_v10, 4  ;;  %v3517_v24 = vadd.f32 %v3516_v26, %v3515_v8  ;;  %v3847_v44 = vadd.f32 %v3846_v6, %v3845_v34 }
 0xc4c   : > { %v3674_v37 = vadd.f32 %v3673_v21, %v3672_v10  ;;  %v3518_v38 = vrot.slane %v3517_v24, 1  ;;  %v3848_v15 = vrot.slane %v3847_v44, 2 }
 0xc4e   : > { %v3675_v39 = vrot.slane %v3674_v37, 2  ;;  %v3519_v40 = vadd.f32 %v3518_v38, %v3517_v24  ;;  %v3849_v42 = vadd.f32 %v3848_v15, %v3847_v44 }
 0xc50   : > { %4820 = vpush %v3519_v40  ;;  %v3676_v30 = vadd.f32 %v3675_v39, %v3674_v37  ;;  %v3850_v47 = vrot.slane %v3849_v42, 1 }
 0xc52   : > { %v3677_v50 = vrot.slane %v3676_v30, 1  ;;  %v3851_v51 = vadd.f32 %v3850_v47, %v3849_v42 }
 0xc54   : > { %v3678_v12 = vadd.f32 %v3677_v50, %v3676_v30 }
 0xc56   : > { %4822 = vpush %v3678_v12 }
 0xc81   : > { %s4821_s25 = spop %4820 }
 0xc82   : > { %v3521_v2 = vstv %s4821_s25 }
 0xc83   : > { %v3522_v13 = vmul.f32 0.015625, %v3521_v2 }
 0xc85   : > { %v3523_v14 = vadd.f32 1e-05, %v3522_v13 }
 0xc87   : > { %4919 = vrsqrt.f32 %v3523_v14  ;;  %s4823_s27 = spop %4822 }
 0xc88   : > { %v3680_v16 = vstv %s4823_s27 }
 0xc89   : > { %v3681_v17 = vmul.f32 0.015625, %v3680_v16 }
 0xc8b   : > { %v3682_v19 = vsub.f32 %v3669_v52, %v3681_v17 }
 0xc8d   : > { %v4010_v22 = vpop.f32.mrb[50].mxu0  ;;  %v3683_v23 = vmul.f32 %v3682_v19, %v3682_v19 }
 0xc8e   : > { %v5693_v49 = vadd.f32 %v5658_v4, %v4010_v22  ;;  %v4699_v25 = vpop.f32.mrb[51].mxu0  ;;  %v5711_v4 = vld [vmem:[%s5802_s13] sm:$0xf] }
 0xc8f   : > { %v3684_v54 = vsel %vm3495_vm9, %v3683_v23, 0.0 }
 0xc90   : > { %v4015_v27 = vmax.f32 %v5693_v49, 0.0  ;;  %3685 = vadd.xlane.f32.xlu0 %v3684_v54 }
 0xc91   : > { %v4920_v28 = vpop.eup %4919 }
 0xc92   : > { %v3525_v31 = vmul.f32 %v4920_v28, %v3509_v59  ;;  %v4016_v11 = vsel %vm3495_vm9, %v4015_v27, 0.0 }
 0xc93   : > { %4017 = vadd.xlane.f32.xlu1 %v4016_v11 }
 0xc94   : > { %v3526_v60 = vmul.f32 %v3525_v31, %v5701_v29 }
 0xc96   : > { %v3527_v32 = vadd.f32 %v3526_v60, %v5711_v4 }
 0xc98   : > { %4047 = vst.msk [vmem:[%s5715_s20] sm:$0xf] %vm3495_vm9, %v3527_v32 }
 0xd1d   : > { %v3686_v35 = vpop.xlane.xlu0 %3685 }
 0xd1e   : > { %v3687_v36 = vrot.slane %v3686_v35, 4 }
 0xd20   : > { %v3688_v41 = vadd.f32 %v3687_v36, %v3686_v35  ;;  %v4018_v52 = vpop.xlane.xlu1 %4017 }
 0xd21   : > { %v4019_v3 = vrot.slane %v4018_v52, 4 }
 0xd22   : > { %v3689_v45 = vrot.slane %v3688_v41, 2 }
 0xd23   : > { %v4020_v0 = vadd.f32 %v4019_v3, %v4018_v52 }
 0xd24   : > { %v3690_v46 = vadd.f32 %v3689_v45, %v3688_v41 }
 0xd25   : > { %v4021_v9 = vrot.slane %v4020_v0, 2 }
 0xd26   : > { %v3691_v48 = vrot.slane %v3690_v46, 1 }
 0xd27   : > { %v4022_v8 = vadd.f32 %v4021_v9, %v4020_v0 }
 0xd28   : > { %v3692_v18 = vadd.f32 %v3691_v48, %v3690_v46 }
 0xd29   : > { %v4023_v21 = vrot.slane %v4022_v8, 1 }
 0xd2a   : > { %4824 = vpush %v3692_v18 }
 0xd2b   : > { %4826 = vpush %v3851_v51  ;;  %v4024_v38 = vadd.f32 %v4023_v21, %v4022_v8 }
 0xd5b   : > { %s4825_s19 = spop %4824 }
 0xd5c   : > { %v3694_v53 = vstv %s4825_s19  ;;  %s4827_s24 = spop %4826  ;;  %s5739_s19 = scalar_lea.hbm %s5803_s14, %s4241_s15 }
 0xd5d   : > { %v3695_v7 = vmul.f32 0.015625, %v3694_v53  ;;  %v3853_v43 = vstv %s4827_s24  ;;  %s5748_s24 = scalar_lea.sflag [#allocation4], %s473_s21 }
 0xd5e   : > { %v3854_v56 = vmul.f32 0.015625, %v3853_v43 }
 0xd5f   : > { %v3696_v20 = vadd.f32 1e-05, %v3695_v7 }
 0xd60   : > { %v3855_v57 = vsub.f32 %v3842_v55, %v3854_v56 }
 0xd61   : > { %4921 = vrsqrt.f32 %v3696_v20 }
 0xd62   : > { %v3856_v59 = vmul.f32 %v3855_v57, %v3855_v57 }
 0xd64   : > { %v3857_v61 = vsel %vm3495_vm9, %v3856_v59, 0.0 }
 0xd65   : > { %3858 = vadd.xlane.f32.xlu0 %v3857_v61 }
 0xd6b   : > { %v4922_v62 = vpop.eup %4921 }
 0xd6c   : > { %v3698_v63 = vmul.f32 %v4922_v62, %v3682_v19 }
 0xd6e   : > { %v3699_v1 = vmul.f32 %v3698_v63, %v5701_v29 }
 0xd70   : > { %v3700_v33 = vadd.f32 %v3699_v1, %v5711_v4 }
 0xd72   : > { %4048 = vst.msk [vmem:[%s5715_s20 + $0x4] sm:$0xf] %vm3495_vm9, %v3700_v33 }
 0xdf2   : > { %v3859_v5 = vpop.xlane.xlu0 %3858 }
 0xdf3   : > { %v3860_v58 = vrot.slane %v3859_v5, 4 }
 0xdf5   : > { %v3861_v55 = vadd.f32 %v3860_v58, %v3859_v5 }
 0xdf7   : > { %v3862_v26 = vrot.slane %v3861_v55, 2 }
 0xdf9   : > { %v3863_v10 = vadd.f32 %v3862_v26, %v3861_v55 }
 0xdfb   : > { %v3864_v24 = vrot.slane %v3863_v10, 1 }
 0xdfd   : > { %v3865_v37 = vadd.f32 %v3864_v24, %v3863_v10 }
 0xdff   : > { %4828 = vpush %v3865_v37 }
 0xe00   : > { %4830 = vpush %v4024_v38 }
 0xe30   : > { %s4829_s25 = spop %4828 }
 0xe31   : > { %v3867_v39 = vstv %s4829_s25  ;;  %s4831_s27 = spop %4830  ;;  %s5031_s25 = smov [#allocation5]  }
 0xe32   : > { %v3868_v40 = vmul.f32 0.015625, %v3867_v39  ;;  %v4026_v30 = vstv %s4831_s27  ;;  %s4959_s27 = sshll.u32 %s5031_s25, 4  ;;  %s4960_s27 = int_to_ptr.vmem [resolvable:$false] %s4959_s27 }
 0xe33   : > { %v4027_v50 = vmul.f32 0.015625, %v4026_v30  ;;  %p4962_p2 = scmp.lt.s32.totalorder %s5741_s22, %s4960_s27 }
 0xe34   : > { %v3869_v12 = vadd.f32 1e-05, %v3868_v40 }
 0xe35   : > { %v4028_v2 = vsub.f32 %v4015_v27, %v4027_v50 }
 0xe36   : > { %4923 = vrsqrt.f32 %v3869_v12 }
 0xe37   : > { %v4029_v13 = vmul.f32 %v4028_v2, %v4028_v2 }
 0xe39   : > { %v4030_v14 = vsel %vm3495_vm9, %v4029_v13, 0.0 }
 0xe3a   : > { %4031 = vadd.xlane.f32.xlu0 %v4030_v14 }
 0xe40   : > { %v4924_v16 = vpop.eup %4923 }
 0xe41   : > { %v3871_v17 = vmul.f32 %v4924_v16, %v3855_v57 }
 0xe43   : > { %v3872_v19 = vmul.f32 %v3871_v17, %v5701_v29 }
 0xe45   : > { %v3873_v22 = vadd.f32 %v3872_v19, %v5711_v4 }
 0xe47   : > { %4049 = vst.msk [vmem:[%s5715_s20 + $0x8] sm:$0xf] %vm3495_vm9, %v3873_v22 }
 0xec7   : > { %v4032_v23 = vpop.xlane.xlu0 %4031 }
 0xec8   : > { %v4033_v25 = vrot.slane %v4032_v23, 4 }
 0xeca   : > { %v4034_v54 = vadd.f32 %v4033_v25, %v4032_v23 }
 0xecc   : > { %v4035_v49 = vrot.slane %v4034_v54, 2 }
 0xece   : > { %v4036_v27 = vadd.f32 %v4035_v49, %v4034_v54 }
 0xed0   : > { %v4037_v28 = vrot.slane %v4036_v27, 1 }
 0xed2   : > { %v4038_v31 = vadd.f32 %v4037_v28, %v4036_v27 }
 0xed4   : > { %4832 = vpush %v4038_v31 }
 0xf05   : > { %s4833_s26 = spop %4832 }
 0xf06   : > { %v4040_v11 = vstv %s4833_s26  ;;  %s4961_s26 = scalar_lea.vmem %s4960_s27, 512 }
 0xf07   : > { %v4041_v60 = vmul.f32 0.015625, %v4040_v11  ;;  %p4963_p3 = scmp.lt.s32.totalorder %s4961_s26, %s4955_s17 }
 0xf09   : > { %v4042_v32 = vadd.f32 1e-05, %v4041_v60  ;;  %p4964_p4 = por %p4963_p3, %p4962_p2 }
 0xf0b   : > { %4925 = vrsqrt.f32 %v4042_v32  ;;  %p4965_p7 = pnand %p4964_p4, %p4958_p12 }
 0xf15   : > { %v4926_v34 = vpop.eup %4925 }
 0xf16   : > { %v4044_v6 = vmul.f32 %v4926_v34, %v4028_v2 }
 0xf18   : > { %v4045_v44 = vmul.f32 %v4044_v6, %v5701_v29 }
 0xf1a   : > { %v4046_v15 = vadd.f32 %v4045_v44, %v5711_v4 }
 0xf1c   : > { %4050 = vst.msk [vmem:[%s5715_s20 + $0xc] sm:$0xf] %vm3495_vm9, %v4046_v15 }
 0xf1d   : > { %4968 = shalt.err (!%p4965_p7)
}
 0xf1e   : > { %s4969_s21 = scalar_lea.hbm %s5739_s19, 256  ;;  %s4973_s28 = scalar_lea.hbm %s5803_s14, 512 }
 0xf1f   : > { %p4970_p8 = scmp.ne.s32.totalorder %s5739_s19, %s4969_s21  ;;  %p4974_p1 = scmp.lt.u32.totalorder %s5739_s19, %s5803_s14 }
 0xf20   : > { %p4975_p0 = scmp.lt.u32.totalorder %s4973_s28, %s4969_s21  ;;  %p4977_p6 = scmp.lt.u32.totalorder %s4969_s21, %s5739_s19 }
 0xf21   : > { %p4971_p11 = pnand %p4970_p8, %p5824_p9 }
 0xf22   : > { %p4976_p5 = por %p4975_p0, %p4974_p1 }
 0xf23   : > { %p4972_p13 = pneg %p4971_p11 }
 0xf24   : > { %p4978_p10 = por %p4977_p6, %p4976_p5 }
 0xf26   : > { %p4979_p12 = pnand %p4978_p10, %p4972_p13 }
 0xf28   : > { %4982 = shalt.err (!%p4979_p12)
}
 0xf29   : > { %s5032_s17 = smov 64   ;;  %s5033_s27 = smov 4  }
 0xf2a   : > { %4838 = dma.vmem_to_hbm [thread:$0]  (%p5824_p9), %s5741_s22, 256, %s5739_s19, %s5748_s24, %s5032_s17, %s5032_s17, %s5033_s27  }
 0xf2b PF: > { %s5825_s26 = sld [smem:[#allocation11_spill]]  ;;  %p4850_p2 = scmp.ge.s32.totalorder %s5021_s16, 2 }
 0xf2c   : > { %s4080_s20 = sand.u32 1, %s5009_s29  }
 0xf2d   : > { %s4081_s21 = scalar_lea.sflag [#allocation4], %s4080_s20 }
 0xf31   : > { %p5826_p3 = scmp.ne.s32.totalorder %s5825_s26, 0 }
 0xf33   : > { %p4845_p4 = pnand %p4850_p2, %p5826_p3 }
 0xf35   : > { %5004 = dma.done.wait (!%p4845_p4), %s4081_s21, 256  }
 0xf36   : > { %5006 = vsyncadd (!%p4845_p4), %s4081_s21, 4294967040  ;;  %s5827_s16 = sld [smem:[#allocation9_spill]]  ;;  %s5828_s15 = sld [smem:[#allocation8_spill]] }
 0xf37   : > { %s5829_s28 = sld [smem:[#allocation10_spill]]  ;;  %s5830_s29 = smov %s5013_s30 }
 0xf3c   : > { %p25_p7 = scmp.ge.s32.totalorder %s5827_s16, 4   ;;  %s5831_s30 = smov %s5828_s15 }
 0xf3d   : > { %s5832_s15 = smov %s5829_s28 }
 0xf3e   :  { %27 = sbr.rel (!%p25_p7) target bundleno = 4 (0x4), region = 125 }
 0xf45   :  { %4086 = vsyncpa [#allocation3], 1 }
 0xf46   :  { %4088 = vsyncpa [#allocation3 + $0x1], 1 }
 0xf47   :  { %4089 = vsyncpa [#allocation4], 1 }
 0xf48   :  { %4091 = vsyncpa [#allocation4 + $0x1], 1 }

</bundles_post_ra>
